<compile_context>
chip_gen: v5e
topology: v5e:2x2
jax: 0.10.0
libtpu: 0.0.40
codegen_flags: <defaults>
</compile_context>

<pallas_src>
import functools
import math

import jax
import jax.numpy as jnp
from jax.experimental import pallas as pl
from jax.experimental.pallas import tpu as pltpu


# ----------------------------------------------------------------------------
# Shared LayerNorm helper (f32 math, eps matches nn.LayerNorm default).
# ----------------------------------------------------------------------------
def _ln(x, g, b, eps=1e-5):
    mu = jnp.mean(x, axis=-1, keepdims=True)
    xc = x - mu
    var = jnp.mean(xc * xc, axis=-1, keepdims=True)
    return xc * jax.lax.rsqrt(var + eps) * g + b


# ----------------------------------------------------------------------------
# Fused TransformerEncoderLayer kernel.  One grid step = one (layer, batch-tile):
# QKV proj -> masked softmax(QK^T)V -> out proj -> residual+LN -> FFN -> residual+LN.
# ----------------------------------------------------------------------------
def _encoder_layer_kernel(x_ref, mask_ref,
                          wqkv_ref, bqkv_ref, wo_ref, bo_ref,
                          g1_ref, be1_ref, w1_ref, b1_ref, w2_ref, b2_ref,
                          g2_ref, be2_ref,
                          out_ref, *, num_heads):
    f32, bf16 = jnp.float32, jnp.bfloat16
    H = num_heads

    x = x_ref[0].astype(f32)                       # (TB, L, E)
    TB, L, E = x.shape
    Dh = E // H
    N = TB * L
    scale = 1.0 / math.sqrt(Dh)

    x2d = x.reshape(N, E)                          # fold batch rows into GEMM M dim
    xb = x2d.astype(bf16)

    # ---- fused Q/K/V projection: ONE dense (N, E) x (E, 3E) MXU GEMM ----
    qkv = jnp.dot(xb, wqkv_ref[0], preferred_element_type=f32) + bqkv_ref[0]   # (N, 3E) f32
    qkv = qkv.reshape(TB, L, 3 * E)

    mask = mask_ref[0]                             # (TB, 1, L) additive key-padding mask

    # ---- scaled dot-product attention, batched over heads per batch row ----
    # Head split/merge is done with static lane slices/concats (pure data movement,
    # no sublane<->outer transposes, no per-head projection GEMMs).
    attn_rows = []
    for b in range(TB):                            # TB is a small static int
        qkv_b = qkv[b]                             # (L, 3E)

        def split_heads(off, _q=qkv_b):            # (L, 3E) -> (H, L, Dh)
            return jnp.concatenate(
                [_q[:, off + h * Dh: off + (h + 1) * Dh][None] for h in range(H)],
                axis=0)

        q = split_heads(0)
        k = split_heads(E)
        v = split_heads(2 * E)

        s = jnp.einsum("hqd,hkd->hqk", q.astype(bf16), k.astype(bf16),
                       preferred_element_type=f32) * scale                     # (H, L, L)
        s = s + mask[b]                            # (1, L) key-padding mask broadcasts
        s = s - jnp.max(s, axis=-1, keepdims=True)
        p = jnp.exp(s)
        # approx reciprocal: EUP slot, ~1e-3 relative error on the softmax denominator.
        p = p * pl.reciprocal(jnp.sum(p, axis=-1, keepdims=True), approx=True)
        ctx = jnp.einsum("hqk,hkd->hqd", p.astype(bf16), v.astype(bf16),
                         preferred_element_type=f32)                           # (H, L, Dh)
        attn_rows.append(jnp.concatenate([ctx[h] for h in range(H)], axis=-1))  # (L, E)

    ctx2d = jnp.concatenate(attn_rows, axis=0)     # (N, E), heads merged into lanes

    # ---- output projection: ONE dense (N, E) x (E, E) GEMM (K = E fills MXU depth) ----
    attn = jnp.dot(ctx2d.astype(bf16), wo_ref[0],
                   preferred_element_type=f32) + bo_ref[0]                     # (N, E)

    # ---- residual + LayerNorm1 ----
    h1 = _ln(x2d + attn, g1_ref[0], be1_ref[0])

    # ---- FFN (pre-transposed bf16 weights, f32 accumulation), ReLU ----
    f = jnp.dot(h1.astype(bf16), w1_ref[0], preferred_element_type=f32) + b1_ref[0]
    f = jnp.maximum(f, 0.0)
    f = jnp.dot(f.astype(bf16), w2_ref[0], preferred_element_type=f32) + b2_ref[0]

    # ---- residual + LayerNorm2, single store ----
    y = _ln(h1 + f, g2_ref[0], be2_ref[0])
    out_ref[0] = y.reshape(TB, L, E).astype(out_ref.dtype)


# ----------------------------------------------------------------------------
# Wrapper: one pallas_call for BOTH encoder layers (layer axis on the grid).
# ----------------------------------------------------------------------------
def _prep_layer_params(params):
    (wq, wk, wv, bq, bk, bv, wo, bo, g1, be1, w1, b1, w2, b2, g2, be2) = params
    bf16, f32 = jnp.bfloat16, jnp.float32
    wqkv = jnp.concatenate([wq.T, wk.T, wv.T], axis=1).astype(bf16)    # (E, 3E)
    bqkv = jnp.concatenate([bq, bk, bv], axis=1).astype(f32)           # (1, 3E)
    return (wqkv, bqkv,
            wo.T.astype(bf16), bo.astype(f32),
            g1.astype(f32), be1.astype(f32),
            w1.T.astype(bf16), b1.astype(f32),
            w2.T.astype(bf16), b2.astype(f32),
            g2.astype(f32), be2.astype(f32))


def _pick_batch_tile(B, L, max_tb=8):
    # Fold batch rows so TB*L fills the MXU M dimension (target <= 512 rows per step).
    target = min(max(1, 512 // max(L, 1)), max_tb)
    tb = 1
    for c in range(1, B + 1):
        if B % c == 0 and c <= target:
            tb = c
    return tb


def pdte_forward(seqs1, seqs2, padding_mask1, padding_mask2, params, num_heads):
    B, L1, E = seqs1.shape
    _, L2, _ = seqs2.shape
    Lmax = max(L1, L2)
    H = num_heads
    F = params["layer1"][10].shape[0]             # w1 is (F, E)
    TB = _pick_batch_tile(B, Lmax)

    # Pad both sequences to a shared length; padded keys are flagged in the mask so
    # they never influence real rows, and padded query rows are sliced off afterwards.
    def pad_seq(s, L):
        return jnp.pad(s, ((0, 0), (0, Lmax - L), (0, 0))) if L < Lmax else s

    def pad_mask(m, L):
        return jnp.pad(m, ((0, 0), (0, Lmax - L)), constant_values=True) if L < Lmax else m

    x_all = jnp.stack([pad_seq(seqs1, L1), pad_seq(seqs2, L2)], axis=0)   # (2, B, Lmax, E)
    mask_all = jnp.stack([pad_mask(padding_mask1, L1),
                          pad_mask(padding_mask2, L2)], axis=0)           # (2, B, Lmax) bool
    mask_add = jnp.where(mask_all, -1e30, 0.0).astype(jnp.float32)[:, :, None, :]  # (2,B,1,Lmax)

    # Per-layer weight re-layout (head-fused, pre-transposed, bf16), stacked on a
    # leading layer axis selected by grid axis 0.
    l1 = _prep_layer_params(params["layer1"])
    l2 = _prep_layer_params(params["layer2"])
    consts = tuple(jnp.stack([a, b], axis=0) for a, b in zip(l1, l2))     # each (2, ...)

    def wspec(a):
        n = a.ndim - 1
        # Constant block across the batch axis -> DMA'd only when the layer changes.
        # TODO(synk): single-buffer these layer-invariant blocks (pipeline_mode=
        # pl.Buffered(1)) once validated on all generations; halves weight VMEM on v7x.
        return pl.BlockSpec((1,) + a.shape[1:], lambda l, b, _n=n: (l,) + (0,) * _n)

    in_specs = [
        pl.BlockSpec((1, TB, Lmax, E), lambda l, b: (l, b, 0, 0)),   # x tile
        pl.BlockSpec((1, TB, 1, Lmax), lambda l, b: (l, b, 0, 0)),   # additive key mask
    ] + [wspec(a) for a in consts]
    out_spec = pl.BlockSpec((1, TB, Lmax, E), lambda l, b: (l, b, 0, 0))

    # VMEM budget: double-buffered I/O blocks + double-buffered per-layer weights +
    # in-kernel f32 intermediates (qkv, scores/probs, ctx, FFN hidden, residuals) + margin.
    N = TB * Lmax
    io_bytes = 4 * (2 * N * E + N)
    wgt_bytes = sum(int(a.size) // 2 * a.dtype.itemsize for a in consts)   # one layer's worth
    inter_bytes = 4 * (3 * N * E + 3 * H * Lmax * Lmax + N * F + 6 * N * E)
    need = 2 * io_bytes + 2 * wgt_bytes + inter_bytes + (4 << 20)
    try:
        kind = jax.devices()[0].device_kind.lower()
    except Exception:
        kind = ""
    cap = (100 << 20) if ("v5" in kind or "v6" in kind) else (48 << 20)    # v7x: 64 MiB physical
    vmem_limit = int(min(cap, max(need, 16 << 20)))
    # TODO(synk): at production sizes (E>=1024, F>=4096, L>=1024) tile the FFN over F and
    # the attention over query blocks (online softmax) instead of relying on the raised
    # VMEM limit; and when E < 128 fold (L, E) into a lane-dense last dim for the output
    # store to avoid masked partial vst's.

    kernel = functools.partial(_encoder_layer_kernel, num_heads=H)
    out = pl.pallas_call(
        kernel,
        out_shape=jax.ShapeDtypeStruct((2, B, Lmax, E), jnp.float32),
        grid_spec=pltpu.PrefetchScalarGridSpec(
            num_scalar_prefetch=0,
            grid=(2, B // TB),                       # (layer, batch tile)
            in_specs=in_specs,
            out_specs=out_spec,
        ),
        compiler_params=pltpu.CompilerParams(
            dimension_semantics=("parallel", "parallel"),   # all steps independent
            vmem_limit_bytes=vmem_limit,
        ),
    )(x_all, mask_add, *consts)

    return out[0, :, :L1], out[1, :, :L2]


# ----------------------------------------------------------------------------
# Pure-JAX reference with the same precision policy (bf16 matmul operands,
# f32 accumulation; f32 softmax/LN) for correctness checking.
# ----------------------------------------------------------------------------
def _encoder_layer_ref(x, key_padding_mask, params, num_heads):
    (wq, wk, wv, bq, bk, bv, wo, bo,
     g1, be1, w1, b1, w2, b2, g2, be2) = params
    B, L, E = x.shape
    H = num_heads
    Dh = E // H
    bf = jnp.bfloat16

    def mm(a, w):  # a @ w.T  (torch weight layout), bf16 operands, f32 accumulation
        return jnp.einsum("...e,oe->...o", a.astype(bf), w.astype(bf),
                          preferred_element_type=jnp.float32)

    q = (mm(x, wq) + bq).reshape(B, L, H, Dh).transpose(0, 2, 1, 3)
    k = (mm(x, wk) + bk).reshape(B, L, H, Dh).transpose(0, 2, 1, 3)
    v = (mm(x, wv) + bv).reshape(B, L, H, Dh).transpose(0, 2, 1, 3)
    s = jnp.einsum("bhqd,bhkd->bhqk", q.astype(bf), k.astype(bf),
                   preferred_element_type=jnp.float32) / math.sqrt(Dh)
    s = jnp.where(key_padding_mask[:, None, None, :], -1e30, s)
    p = jax.nn.softmax(s, axis=-1)
    ctx = jnp.einsum("bhqk,bhkd->bhqd", p.astype(bf), v.astype(bf),
                     preferred_element_type=jnp.float32)
    ctx = ctx.transpose(0, 2, 1, 3).reshape(B, L, E)
    attn = mm(ctx, wo) + bo

    h = _ln(x + attn, g1, be1)
    f = jnp.maximum(mm(h, w1) + b1, 0.0)
    f = mm(f, w2) + b2
    return _ln(h + f, g2, be2)


def pdte_ref(seqs1, seqs2, padding_mask1, padding_mask2, params, num_heads):
    o1 = _encoder_layer_ref(seqs1, padding_mask1, params["layer1"], num_heads)
    o2 = _encoder_layer_ref(seqs2, padding_mask2, params["layer2"], num_heads)
    return o1, o2


# ----------------------------------------------------------------------------
# Deterministic parameter construction (torch nn.TransformerEncoderLayer layout).
# ----------------------------------------------------------------------------
def make_layer_params(key, E, F):
    ks = jax.random.split(key, 10)
    w = lambda k, s: jax.random.normal(k, s, jnp.float32) * 0.05
    wq, wk, wv, wo = w(ks[0], (E, E)), w(ks[1], (E, E)), w(ks[2], (E, E)), w(ks[3], (E, E))
    bq = w(ks[4], (1, E)) * 0.1
    bk = jnp.zeros((1, E), jnp.float32)
    bv = w(ks[5], (1, E)) * 0.1
    bo = jnp.zeros((1, E), jnp.float32)
    g1, be1 = jnp.ones((1, E), jnp.float32), jnp.zeros((1, E), jnp.float32)
    w1, b1 = w(ks[6], (F, E)), w(ks[7], (1, F)) * 0.1
    w2, b2 = w(ks[8], (E, F)), w(ks[9], (1, E)) * 0.1
    g2, be2 = jnp.ones((1, E), jnp.float32), jnp.zeros((1, E), jnp.float32)
    return (wq, wk, wv, bq, bk, bv, wo, bo, g1, be1, w1, b1, w2, b2, g2, be2)


if __name__ == "__main__":
    B, L1, L2, E, H, F = 2, 8, 16, 32, 4, 64

    key = jax.random.PRNGKey(0)
    k1, k2, kp1, kp2 = jax.random.split(key, 4)
    seqs1 = jax.random.normal(k1, (B, L1, E), jnp.float32)
    seqs2 = jax.random.normal(k2, (B, L2, E), jnp.float32)

    # key_padding_mask: True = padded (ignored), as in nn.MultiheadAttention.
    len1 = jnp.array([L1, L1 - 3])
    len2 = jnp.array([L2, L2 - 5])
    padding_mask1 = jnp.arange(L1)[None, :] >= len1[:, None]   # (B, L1) bool
    padding_mask2 = jnp.arange(L2)[None, :] >= len2[:, None]   # (B, L2) bool

    params = {"layer1": make_layer_params(kp1, E, F),
              "layer2": make_layer_params(kp2, E, F)}

    out1, out2 = pdte_forward(seqs1, seqs2, padding_mask1, padding_mask2, params, H)
    jax.block_until_ready((out1, out2))

    ref1, ref2 = pdte_ref(seqs1, seqs2, padding_mask1, padding_mask2, params, H)
    assert out1.shape == (B, L1, E) and out2.shape == (B, L2, E)
    assert jnp.allclose(out1, ref1, atol=2e-2, rtol=2e-2), float(jnp.max(jnp.abs(out1 - ref1)))
    assert jnp.allclose(out2, ref2, atol=2e-2, rtol=2e-2), float(jnp.max(jnp.abs(out2 - ref2)))

    print("KERNEL_OK")
</pallas_src>

<mosaic_0001>
module attributes {stable_mosaic.version = 11 : i64} {
  func.func @_encoder_layer_kernel(%arg0: i32, %arg1: i32, %arg2: memref<1x2x16x32xf32, #tpu.memory_space<vmem>>, %arg3: memref<1x2x1x16xf32, #tpu.memory_space<vmem>>, %arg4: memref<1x32x96xbf16, #tpu.memory_space<vmem>>, %arg5: memref<1x1x96xf32, #tpu.memory_space<vmem>>, %arg6: memref<1x32x32xbf16, #tpu.memory_space<vmem>>, %arg7: memref<1x1x32xf32, #tpu.memory_space<vmem>>, %arg8: memref<1x1x32xf32, #tpu.memory_space<vmem>>, %arg9: memref<1x1x32xf32, #tpu.memory_space<vmem>>, %arg10: memref<1x32x64xbf16, #tpu.memory_space<vmem>>, %arg11: memref<1x1x64xf32, #tpu.memory_space<vmem>>, %arg12: memref<1x64x32xbf16, #tpu.memory_space<vmem>>, %arg13: memref<1x1x32xf32, #tpu.memory_space<vmem>>, %arg14: memref<1x1x32xf32, #tpu.memory_space<vmem>>, %arg15: memref<1x1x32xf32, #tpu.memory_space<vmem>>, %arg16: memref<1x2x16x32xf32, #tpu.memory_space<vmem>>) attributes {dimension_semantics = [#tpu.dimension_semantics<parallel>, #tpu.dimension_semantics<parallel>], iteration_bounds = array<i64: 2, 1>, scalar_prefetch = 0 : i64, scratch_operands = 0 : i64, tpu.core_type = #tpu.core_type<tc>, window_params = [{transform_indices = @transform_0, window_bounds = array<i64: 1, 2, 16, 32>}, {transform_indices = @transform_1, window_bounds = array<i64: 1, 2, 1, 16>}, {transform_indices = @transform_2, window_bounds = array<i64: 1, 32, 96>}, {transform_indices = @transform_3, window_bounds = array<i64: 1, 1, 96>}, {transform_indices = @transform_4, window_bounds = array<i64: 1, 32, 32>}, {transform_indices = @transform_5, window_bounds = array<i64: 1, 1, 32>}, {transform_indices = @transform_6, window_bounds = array<i64: 1, 1, 32>}, {transform_indices = @transform_7, window_bounds = array<i64: 1, 1, 32>}, {transform_indices = @transform_8, window_bounds = array<i64: 1, 32, 64>}, {transform_indices = @transform_9, window_bounds = array<i64: 1, 1, 64>}, {transform_indices = @transform_10, window_bounds = array<i64: 1, 64, 32>}, {transform_indices = @transform_11, window_bounds = array<i64: 1, 1, 32>}, {transform_indices = @transform_12, window_bounds = array<i64: 1, 1, 32>}, {transform_indices = @transform_13, window_bounds = array<i64: 1, 1, 32>}, {transform_indices = @transform_14, window_bounds = array<i64: 1, 2, 16, 32>}]} {
    %c0 = arith.constant 0 : index
    %c0_0 = arith.constant 0 : index
    %c0_1 = arith.constant 0 : index
    %c0_2 = arith.constant 0 : index
    %0 = vector.load %arg2[%c0, %c0_0, %c0_1, %c0_2] : memref<1x2x16x32xf32, #tpu.memory_space<vmem>>, vector<1x2x16x32xf32>
    %1 = vector.shape_cast %0 : vector<1x2x16x32xf32> to vector<2x16x32xf32>
    %2 = vector.shape_cast %1 : vector<2x16x32xf32> to vector<32x32xf32>
    %3 = arith.truncf %2 : vector<32x32xf32> to vector<32x32xbf16>
    %c0_3 = arith.constant 0 : index
    %c0_4 = arith.constant 0 : index
    %c0_5 = arith.constant 0 : index
    %4 = vector.load %arg4[%c0_3, %c0_4, %c0_5] : memref<1x32x96xbf16, #tpu.memory_space<vmem>>, vector<1x32x96xbf16>
    %5 = vector.shape_cast %4 : vector<1x32x96xbf16> to vector<32x96xbf16>
    %cst = arith.constant dense<0.000000e+00> : vector<32x96xf32>
    %6 = tpu.matmul %3, %5, %cst {dimension_numbers = #tpu.dot_dimension_numbers<[1], [0], [0], [1], [0, 0, 1, 1], [], []>} : vector<32x32xbf16>, vector<32x96xbf16>, vector<32x96xf32> -> vector<32x96xf32>
    %c0_6 = arith.constant 0 : index
    %c0_7 = arith.constant 0 : index
    %c0_8 = arith.constant 0 : index
    %7 = vector.load %arg5[%c0_6, %c0_7, %c0_8] : memref<1x1x96xf32, #tpu.memory_space<vmem>>, vector<1x1x96xf32>
    %8 = vector.shape_cast %7 : vector<1x1x96xf32> to vector<1x96xf32>
    %9 = vector.broadcast %8 : vector<1x96xf32> to vector<32x96xf32>
    %10 = arith.addf %6, %9 : vector<32x96xf32>
    %11 = vector.shape_cast %10 : vector<32x96xf32> to vector<2x16x96xf32>
    %c0_9 = arith.constant 0 : index
    %c0_10 = arith.constant 0 : index
    %c0_11 = arith.constant 0 : index
    %c0_12 = arith.constant 0 : index
    %12 = vector.load %arg3[%c0_9, %c0_10, %c0_11, %c0_12] : memref<1x2x1x16xf32, #tpu.memory_space<vmem>>, vector<1x2x1x16xf32>
    %13 = vector.shape_cast %12 : vector<1x2x1x16xf32> to vector<2x1x16xf32>
    %14 = vector.extract_strided_slice %11 {offsets = [0, 0, 0], sizes = [1, 16, 96], strides = [1, 1, 1]} : vector<2x16x96xf32> to vector<1x16x96xf32>
    %15 = vector.shape_cast %14 : vector<1x16x96xf32> to vector<16x96xf32>
    %16 = vector.extract_strided_slice %15 {offsets = [0, 0], sizes = [16, 8], strides = [1, 1]} : vector<16x96xf32> to vector<16x8xf32>
    %17 = vector.shape_cast %16 : vector<16x8xf32> to vector<1x16x8xf32>
    %18 = vector.extract_strided_slice %15 {offsets = [0, 8], sizes = [16, 8], strides = [1, 1]} : vector<16x96xf32> to vector<16x8xf32>
    %19 = vector.shape_cast %18 : vector<16x8xf32> to vector<1x16x8xf32>
    %20 = vector.extract_strided_slice %15 {offsets = [0, 16], sizes = [16, 8], strides = [1, 1]} : vector<16x96xf32> to vector<16x8xf32>
    %21 = vector.shape_cast %20 : vector<16x8xf32> to vector<1x16x8xf32>
    %22 = vector.extract_strided_slice %15 {offsets = [0, 24], sizes = [16, 8], strides = [1, 1]} : vector<16x96xf32> to vector<16x8xf32>
    %23 = vector.shape_cast %22 : vector<16x8xf32> to vector<1x16x8xf32>
    %24 = tpu.concatenate %17, %19, %21, %23 in 0 : vector<1x16x8xf32>, vector<1x16x8xf32>, vector<1x16x8xf32>, vector<1x16x8xf32> -> vector<4x16x8xf32>
    %25 = vector.extract_strided_slice %15 {offsets = [0, 32], sizes = [16, 8], strides = [1, 1]} : vector<16x96xf32> to vector<16x8xf32>
    %26 = vector.shape_cast %25 : vector<16x8xf32> to vector<1x16x8xf32>
    %27 = vector.extract_strided_slice %15 {offsets = [0, 40], sizes = [16, 8], strides = [1, 1]} : vector<16x96xf32> to vector<16x8xf32>
    %28 = vector.shape_cast %27 : vector<16x8xf32> to vector<1x16x8xf32>
    %29 = vector.extract_strided_slice %15 {offsets = [0, 48], sizes = [16, 8], strides = [1, 1]} : vector<16x96xf32> to vector<16x8xf32>
    %30 = vector.shape_cast %29 : vector<16x8xf32> to vector<1x16x8xf32>
    %31 = vector.extract_strided_slice %15 {offsets = [0, 56], sizes = [16, 8], strides = [1, 1]} : vector<16x96xf32> to vector<16x8xf32>
    %32 = vector.shape_cast %31 : vector<16x8xf32> to vector<1x16x8xf32>
    %33 = tpu.concatenate %26, %28, %30, %32 in 0 : vector<1x16x8xf32>, vector<1x16x8xf32>, vector<1x16x8xf32>, vector<1x16x8xf32> -> vector<4x16x8xf32>
    %34 = vector.extract_strided_slice %15 {offsets = [0, 64], sizes = [16, 8], strides = [1, 1]} : vector<16x96xf32> to vector<16x8xf32>
    %35 = vector.shape_cast %34 : vector<16x8xf32> to vector<1x16x8xf32>
    %36 = vector.extract_strided_slice %15 {offsets = [0, 72], sizes = [16, 8], strides = [1, 1]} : vector<16x96xf32> to vector<16x8xf32>
    %37 = vector.shape_cast %36 : vector<16x8xf32> to vector<1x16x8xf32>
    %38 = vector.extract_strided_slice %15 {offsets = [0, 80], sizes = [16, 8], strides = [1, 1]} : vector<16x96xf32> to vector<16x8xf32>
    %39 = vector.shape_cast %38 : vector<16x8xf32> to vector<1x16x8xf32>
    %40 = vector.extract_strided_slice %15 {offsets = [0, 88], sizes = [16, 8], strides = [1, 1]} : vector<16x96xf32> to vector<16x8xf32>
    %41 = vector.shape_cast %40 : vector<16x8xf32> to vector<1x16x8xf32>
    %42 = tpu.concatenate %35, %37, %39, %41 in 0 : vector<1x16x8xf32>, vector<1x16x8xf32>, vector<1x16x8xf32>, vector<1x16x8xf32> -> vector<4x16x8xf32>
    %43 = arith.truncf %24 : vector<4x16x8xf32> to vector<4x16x8xbf16>
    %44 = arith.truncf %33 : vector<4x16x8xf32> to vector<4x16x8xbf16>
    "tpu.trace_start"() <{level = 10 : i32, message = "hqd,hkd->hqk"}> : () -> ()
    %cst_13 = arith.constant dense<0.000000e+00> : vector<4x16x16xf32>
    %45 = tpu.matmul %43, %44, %cst_13 {dimension_numbers = #tpu.dot_dimension_numbers<[2], [2], [1], [1], [0, 0, 0, 1, 1, 1], [0], [0]>} : vector<4x16x8xbf16>, vector<4x16x8xbf16>, vector<4x16x16xf32> -> vector<4x16x16xf32>
    "tpu.trace_stop"() : () -> ()
    %cst_14 = arith.constant 0.353553385 : f32
    %46 = vector.broadcast %cst_14 : f32 to vector<4x16x16xf32>
    %47 = arith.mulf %45, %46 : vector<4x16x16xf32>
    %48 = vector.extract_strided_slice %13 {offsets = [0, 0, 0], sizes = [1, 1, 16], strides = [1, 1, 1]} : vector<2x1x16xf32> to vector<1x1x16xf32>
    %49 = vector.shape_cast %48 : vector<1x1x16xf32> to vector<1x16xf32>
    %50 = vector.shape_cast %49 : vector<1x16xf32> to vector<1x1x16xf32>
    %51 = vector.broadcast %50 : vector<1x1x16xf32> to vector<4x16x16xf32>
    %52 = arith.addf %47, %51 : vector<4x16x16xf32>
    %cst_15 = arith.constant dense<0xFF800000> : vector<4x16xf32>
    %53 = vector.multi_reduction <maximumf>, %52, %cst_15 [2] : vector<4x16x16xf32> to vector<4x16xf32>
    %54 = vector.shape_cast %53 : vector<4x16xf32> to vector<4x16x1xf32>
    %55 = vector.broadcast %54 : vector<4x16x1xf32> to vector<4x16x16xf32>
    %56 = arith.subf %52, %55 : vector<4x16x16xf32>
    %57 = math.exp %56 : vector<4x16x16xf32>
    %cst_16 = arith.constant dense<0.000000e+00> : vector<4x16xf32>
    %58 = vector.multi_reduction <add>, %57, %cst_16 [2] : vector<4x16x16xf32> to vector<4x16xf32>
    %59 = vector.shape_cast %58 : vector<4x16xf32> to vector<4x16x1xf32>
    %60 = tpu.reciprocal %59 {approx = true} : vector<4x16x1xf32> -> vector<4x16x1xf32>
    %61 = vector.broadcast %60 : vector<4x16x1xf32> to vector<4x16x16xf32>
    %62 = arith.mulf %57, %61 : vector<4x16x16xf32>
    %63 = arith.truncf %62 : vector<4x16x16xf32> to vector<4x16x16xbf16>
    %64 = arith.truncf %42 : vector<4x16x8xf32> to vector<4x16x8xbf16>
    "tpu.trace_start"() <{level = 10 : i32, message = "hqk,hkd->hqd"}> : () -> ()
    %cst_17 = arith.constant dense<0.000000e+00> : vector<4x16x8xf32>
    %65 = tpu.matmul %63, %64, %cst_17 {dimension_numbers = #tpu.dot_dimension_numbers<[2], [1], [1], [2], [0, 0, 0, 1, 1, 2], [0], [0]>} : vector<4x16x16xbf16>, vector<4x16x8xbf16>, vector<4x16x8xf32> -> vector<4x16x8xf32>
    "tpu.trace_stop"() : () -> ()
    %66 = vector.extract_strided_slice %65 {offsets = [0, 0, 0], sizes = [1, 16, 8], strides = [1, 1, 1]} : vector<4x16x8xf32> to vector<1x16x8xf32>
    %67 = vector.shape_cast %66 : vector<1x16x8xf32> to vector<16x8xf32>
    %68 = vector.extract_strided_slice %65 {offsets = [1, 0, 0], sizes = [1, 16, 8], strides = [1, 1, 1]} : vector<4x16x8xf32> to vector<1x16x8xf32>
    %69 = vector.shape_cast %68 : vector<1x16x8xf32> to vector<16x8xf32>
    %70 = vector.extract_strided_slice %65 {offsets = [2, 0, 0], sizes = [1, 16, 8], strides = [1, 1, 1]} : vector<4x16x8xf32> to vector<1x16x8xf32>
    %71 = vector.shape_cast %70 : vector<1x16x8xf32> to vector<16x8xf32>
    %72 = vector.extract_strided_slice %65 {offsets = [3, 0, 0], sizes = [1, 16, 8], strides = [1, 1, 1]} : vector<4x16x8xf32> to vector<1x16x8xf32>
    %73 = vector.shape_cast %72 : vector<1x16x8xf32> to vector<16x8xf32>
    %74 = tpu.concatenate %67, %69, %71, %73 in 1 : vector<16x8xf32>, vector<16x8xf32>, vector<16x8xf32>, vector<16x8xf32> -> vector<16x32xf32>
    %75 = vector.extract_strided_slice %11 {offsets = [1, 0, 0], sizes = [1, 16, 96], strides = [1, 1, 1]} : vector<2x16x96xf32> to vector<1x16x96xf32>
    %76 = vector.shape_cast %75 : vector<1x16x96xf32> to vector<16x96xf32>
    %77 = vector.extract_strided_slice %76 {offsets = [0, 0], sizes = [16, 8], strides = [1, 1]} : vector<16x96xf32> to vector<16x8xf32>
    %78 = vector.shape_cast %77 : vector<16x8xf32> to vector<1x16x8xf32>
    %79 = vector.extract_strided_slice %76 {offsets = [0, 8], sizes = [16, 8], strides = [1, 1]} : vector<16x96xf32> to vector<16x8xf32>
    %80 = vector.shape_cast %79 : vector<16x8xf32> to vector<1x16x8xf32>
    %81 = vector.extract_strided_slice %76 {offsets = [0, 16], sizes = [16, 8], strides = [1, 1]} : vector<16x96xf32> to vector<16x8xf32>
    %82 = vector.shape_cast %81 : vector<16x8xf32> to vector<1x16x8xf32>
    %83 = vector.extract_strided_slice %76 {offsets = [0, 24], sizes = [16, 8], strides = [1, 1]} : vector<16x96xf32> to vector<16x8xf32>
    %84 = vector.shape_cast %83 : vector<16x8xf32> to vector<1x16x8xf32>
    %85 = tpu.concatenate %78, %80, %82, %84 in 0 : vector<1x16x8xf32>, vector<1x16x8xf32>, vector<1x16x8xf32>, vector<1x16x8xf32> -> vector<4x16x8xf32>
    %86 = vector.extract_strided_slice %76 {offsets = [0, 32], sizes = [16, 8], strides = [1, 1]} : vector<16x96xf32> to vector<16x8xf32>
    %87 = vector.shape_cast %86 : vector<16x8xf32> to vector<1x16x8xf32>
    %88 = vector.extract_strided_slice %76 {offsets = [0, 40], sizes = [16, 8], strides = [1, 1]} : vector<16x96xf32> to vector<16x8xf32>
    %89 = vector.shape_cast %88 : vector<16x8xf32> to vector<1x16x8xf32>
    %90 = vector.extract_strided_slice %76 {offsets = [0, 48], sizes = [16, 8], strides = [1, 1]} : vector<16x96xf32> to vector<16x8xf32>
    %91 = vector.shape_cast %90 : vector<16x8xf32> to vector<1x16x8xf32>
    %92 = vector.extract_strided_slice %76 {offsets = [0, 56], sizes = [16, 8], strides = [1, 1]} : vector<16x96xf32> to vector<16x8xf32>
    %93 = vector.shape_cast %92 : vector<16x8xf32> to vector<1x16x8xf32>
    %94 = tpu.concatenate %87, %89, %91, %93 in 0 : vector<1x16x8xf32>, vector<1x16x8xf32>, vector<1x16x8xf32>, vector<1x16x8xf32> -> vector<4x16x8xf32>
    %95 = vector.extract_strided_slice %76 {offsets = [0, 64], sizes = [16, 8], strides = [1, 1]} : vector<16x96xf32> to vector<16x8xf32>
    %96 = vector.shape_cast %95 : vector<16x8xf32> to vector<1x16x8xf32>
    %97 = vector.extract_strided_slice %76 {offsets = [0, 72], sizes = [16, 8], strides = [1, 1]} : vector<16x96xf32> to vector<16x8xf32>
    %98 = vector.shape_cast %97 : vector<16x8xf32> to vector<1x16x8xf32>
    %99 = vector.extract_strided_slice %76 {offsets = [0, 80], sizes = [16, 8], strides = [1, 1]} : vector<16x96xf32> to vector<16x8xf32>
    %100 = vector.shape_cast %99 : vector<16x8xf32> to vector<1x16x8xf32>
    %101 = vector.extract_strided_slice %76 {offsets = [0, 88], sizes = [16, 8], strides = [1, 1]} : vector<16x96xf32> to vector<16x8xf32>
    %102 = vector.shape_cast %101 : vector<16x8xf32> to vector<1x16x8xf32>
    %103 = tpu.concatenate %96, %98, %100, %102 in 0 : vector<1x16x8xf32>, vector<1x16x8xf32>, vector<1x16x8xf32>, vector<1x16x8xf32> -> vector<4x16x8xf32>
    %104 = arith.truncf %85 : vector<4x16x8xf32> to vector<4x16x8xbf16>
    %105 = arith.truncf %94 : vector<4x16x8xf32> to vector<4x16x8xbf16>
    "tpu.trace_start"() <{level = 10 : i32, message = "hqd,hkd->hqk"}> : () -> ()
    %cst_18 = arith.constant dense<0.000000e+00> : vector<4x16x16xf32>
    %106 = tpu.matmul %104, %105, %cst_18 {dimension_numbers = #tpu.dot_dimension_numbers<[2], [2], [1], [1], [0, 0, 0, 1, 1, 1], [0], [0]>} : vector<4x16x8xbf16>, vector<4x16x8xbf16>, vector<4x16x16xf32> -> vector<4x16x16xf32>
    "tpu.trace_stop"() : () -> ()
    %cst_19 = arith.constant 0.353553385 : f32
    %107 = vector.broadcast %cst_19 : f32 to vector<4x16x16xf32>
    %108 = arith.mulf %106, %107 : vector<4x16x16xf32>
    %109 = vector.extract_strided_slice %13 {offsets = [1, 0, 0], sizes = [1, 1, 16], strides = [1, 1, 1]} : vector<2x1x16xf32> to vector<1x1x16xf32>
    %110 = vector.shape_cast %109 : vector<1x1x16xf32> to vector<1x16xf32>
    %111 = vector.shape_cast %110 : vector<1x16xf32> to vector<1x1x16xf32>
    %112 = vector.broadcast %111 : vector<1x1x16xf32> to vector<4x16x16xf32>
    %113 = arith.addf %108, %112 : vector<4x16x16xf32>
    %cst_20 = arith.constant dense<0xFF800000> : vector<4x16xf32>
    %114 = vector.multi_reduction <maximumf>, %113, %cst_20 [2] : vector<4x16x16xf32> to vector<4x16xf32>
    %115 = vector.shape_cast %114 : vector<4x16xf32> to vector<4x16x1xf32>
    %116 = vector.broadcast %115 : vector<4x16x1xf32> to vector<4x16x16xf32>
    %117 = arith.subf %113, %116 : vector<4x16x16xf32>
    %118 = math.exp %117 : vector<4x16x16xf32>
    %cst_21 = arith.constant dense<0.000000e+00> : vector<4x16xf32>
    %119 = vector.multi_reduction <add>, %118, %cst_21 [2] : vector<4x16x16xf32> to vector<4x16xf32>
    %120 = vector.shape_cast %119 : vector<4x16xf32> to vector<4x16x1xf32>
    %121 = tpu.reciprocal %120 {approx = true} : vector<4x16x1xf32> -> vector<4x16x1xf32>
    %122 = vector.broadcast %121 : vector<4x16x1xf32> to vector<4x16x16xf32>
    %123 = arith.mulf %118, %122 : vector<4x16x16xf32>
    %124 = arith.truncf %123 : vector<4x16x16xf32> to vector<4x16x16xbf16>
    %125 = arith.truncf %103 : vector<4x16x8xf32> to vector<4x16x8xbf16>
    "tpu.trace_start"() <{level = 10 : i32, message = "hqk,hkd->hqd"}> : () -> ()
    %cst_22 = arith.constant dense<0.000000e+00> : vector<4x16x8xf32>
    %126 = tpu.matmul %124, %125, %cst_22 {dimension_numbers = #tpu.dot_dimension_numbers<[2], [1], [1], [2], [0, 0, 0, 1, 1, 2], [0], [0]>} : vector<4x16x16xbf16>, vector<4x16x8xbf16>, vector<4x16x8xf32> -> vector<4x16x8xf32>
    "tpu.trace_stop"() : () -> ()
    %127 = vector.extract_strided_slice %126 {offsets = [0, 0, 0], sizes = [1, 16, 8], strides = [1, 1, 1]} : vector<4x16x8xf32> to vector<1x16x8xf32>
    %128 = vector.shape_cast %127 : vector<1x16x8xf32> to vector<16x8xf32>
    %129 = vector.extract_strided_slice %126 {offsets = [1, 0, 0], sizes = [1, 16, 8], strides = [1, 1, 1]} : vector<4x16x8xf32> to vector<1x16x8xf32>
    %130 = vector.shape_cast %129 : vector<1x16x8xf32> to vector<16x8xf32>
    %131 = vector.extract_strided_slice %126 {offsets = [2, 0, 0], sizes = [1, 16, 8], strides = [1, 1, 1]} : vector<4x16x8xf32> to vector<1x16x8xf32>
    %132 = vector.shape_cast %131 : vector<1x16x8xf32> to vector<16x8xf32>
    %133 = vector.extract_strided_slice %126 {offsets = [3, 0, 0], sizes = [1, 16, 8], strides = [1, 1, 1]} : vector<4x16x8xf32> to vector<1x16x8xf32>
    %134 = vector.shape_cast %133 : vector<1x16x8xf32> to vector<16x8xf32>
    %135 = tpu.concatenate %128, %130, %132, %134 in 1 : vector<16x8xf32>, vector<16x8xf32>, vector<16x8xf32>, vector<16x8xf32> -> vector<16x32xf32>
    %136 = tpu.concatenate %74, %135 in 0 : vector<16x32xf32>, vector<16x32xf32> -> vector<32x32xf32>
    %137 = arith.truncf %136 : vector<32x32xf32> to vector<32x32xbf16>
    %c0_23 = arith.constant 0 : index
    %c0_24 = arith.constant 0 : index
    %c0_25 = arith.constant 0 : index
    %138 = vector.load %arg6[%c0_23, %c0_24, %c0_25] : memref<1x32x32xbf16, #tpu.memory_space<vmem>>, vector<1x32x32xbf16>
    %139 = vector.shape_cast %138 : vector<1x32x32xbf16> to vector<32x32xbf16>
    %cst_26 = arith.constant dense<0.000000e+00> : vector<32x32xf32>
    %140 = tpu.matmul %137, %139, %cst_26 {dimension_numbers = #tpu.dot_dimension_numbers<[1], [0], [0], [1], [0, 0, 1, 1], [], []>} : vector<32x32xbf16>, vector<32x32xbf16>, vector<32x32xf32> -> vector<32x32xf32>
    %c0_27 = arith.constant 0 : index
    %c0_28 = arith.constant 0 : index
    %c0_29 = arith.constant 0 : index
    %141 = vector.load %arg7[%c0_27, %c0_28, %c0_29] : memref<1x1x32xf32, #tpu.memory_space<vmem>>, vector<1x1x32xf32>
    %142 = vector.shape_cast %141 : vector<1x1x32xf32> to vector<1x32xf32>
    %143 = vector.broadcast %142 : vector<1x32xf32> to vector<32x32xf32>
    %144 = arith.addf %140, %143 : vector<32x32xf32>
    %145 = arith.addf %2, %144 : vector<32x32xf32>
    %c0_30 = arith.constant 0 : index
    %c0_31 = arith.constant 0 : index
    %c0_32 = arith.constant 0 : index
    %146 = vector.load %arg8[%c0_30, %c0_31, %c0_32] : memref<1x1x32xf32, #tpu.memory_space<vmem>>, vector<1x1x32xf32>
    %147 = vector.shape_cast %146 : vector<1x1x32xf32> to vector<1x32xf32>
    %c0_33 = arith.constant 0 : index
    %c0_34 = arith.constant 0 : index
    %c0_35 = arith.constant 0 : index
    %148 = vector.load %arg9[%c0_33, %c0_34, %c0_35] : memref<1x1x32xf32, #tpu.memory_space<vmem>>, vector<1x1x32xf32>
    %149 = vector.shape_cast %148 : vector<1x1x32xf32> to vector<1x32xf32>
    %cst_36 = arith.constant dense<0.000000e+00> : vector<32xf32>
    %150 = vector.multi_reduction <add>, %145, %cst_36 [1] : vector<32x32xf32> to vector<32xf32>
    %151 = vector.shape_cast %150 : vector<32xf32> to vector<32x1xf32>
    %cst_37 = arith.constant 3.200000e+01 : f32
    %152 = vector.broadcast %cst_37 : f32 to vector<32x1xf32>
    %153 = arith.divf %151, %152 : vector<32x1xf32>
    %154 = vector.broadcast %153 : vector<32x1xf32> to vector<32x32xf32>
    %155 = arith.subf %145, %154 : vector<32x32xf32>
    %156 = arith.mulf %155, %155 : vector<32x32xf32>
    %cst_38 = arith.constant dense<0.000000e+00> : vector<32xf32>
    %157 = vector.multi_reduction <add>, %156, %cst_38 [1] : vector<32x32xf32> to vector<32xf32>
    %158 = vector.shape_cast %157 : vector<32xf32> to vector<32x1xf32>
    %cst_39 = arith.constant 3.200000e+01 : f32
    %159 = vector.broadcast %cst_39 : f32 to vector<32x1xf32>
    %160 = arith.divf %158, %159 : vector<32x1xf32>
    %cst_40 = arith.constant 9.99999974E-6 : f32
    %161 = vector.broadcast %cst_40 : f32 to vector<32x1xf32>
    %162 = arith.addf %160, %161 : vector<32x1xf32>
    %163 = math.rsqrt %162 : vector<32x1xf32>
    %164 = vector.broadcast %163 : vector<32x1xf32> to vector<32x32xf32>
    %165 = arith.mulf %155, %164 : vector<32x32xf32>
    %166 = vector.broadcast %147 : vector<1x32xf32> to vector<32x32xf32>
    %167 = arith.mulf %165, %166 : vector<32x32xf32>
    %168 = vector.broadcast %149 : vector<1x32xf32> to vector<32x32xf32>
    %169 = arith.addf %167, %168 : vector<32x32xf32>
    %170 = arith.truncf %169 : vector<32x32xf32> to vector<32x32xbf16>
    %c0_41 = arith.constant 0 : index
    %c0_42 = arith.constant 0 : index
    %c0_43 = arith.constant 0 : index
    %171 = vector.load %arg10[%c0_41, %c0_42, %c0_43] : memref<1x32x64xbf16, #tpu.memory_space<vmem>>, vector<1x32x64xbf16>
    %172 = vector.shape_cast %171 : vector<1x32x64xbf16> to vector<32x64xbf16>
    %cst_44 = arith.constant dense<0.000000e+00> : vector<32x64xf32>
    %173 = tpu.matmul %170, %172, %cst_44 {dimension_numbers = #tpu.dot_dimension_numbers<[1], [0], [0], [1], [0, 0, 1, 1], [], []>} : vector<32x32xbf16>, vector<32x64xbf16>, vector<32x64xf32> -> vector<32x64xf32>
    %c0_45 = arith.constant 0 : index
    %c0_46 = arith.constant 0 : index
    %c0_47 = arith.constant 0 : index
    %174 = vector.load %arg11[%c0_45, %c0_46, %c0_47] : memref<1x1x64xf32, #tpu.memory_space<vmem>>, vector<1x1x64xf32>
    %175 = vector.shape_cast %174 : vector<1x1x64xf32> to vector<1x64xf32>
    %176 = vector.broadcast %175 : vector<1x64xf32> to vector<32x64xf32>
    %177 = arith.addf %173, %176 : vector<32x64xf32>
    %cst_48 = arith.constant 0.000000e+00 : f32
    %178 = vector.broadcast %cst_48 : f32 to vector<32x64xf32>
    %179 = arith.maximumf %177, %178 : vector<32x64xf32>
    %180 = arith.truncf %179 : vector<32x64xf32> to vector<32x64xbf16>
    %c0_49 = arith.constant 0 : index
    %c0_50 = arith.constant 0 : index
    %c0_51 = arith.constant 0 : index
    %181 = vector.load %arg12[%c0_49, %c0_50, %c0_51] : memref<1x64x32xbf16, #tpu.memory_space<vmem>>, vector<1x64x32xbf16>
    %182 = vector.shape_cast %181 : vector<1x64x32xbf16> to vector<64x32xbf16>
    %cst_52 = arith.constant dense<0.000000e+00> : vector<32x32xf32>
    %183 = tpu.matmul %180, %182, %cst_52 {dimension_numbers = #tpu.dot_dimension_numbers<[1], [0], [0], [1], [0, 0, 1, 1], [], []>} : vector<32x64xbf16>, vector<64x32xbf16>, vector<32x32xf32> -> vector<32x32xf32>
    %c0_53 = arith.constant 0 : index
    %c0_54 = arith.constant 0 : index
    %c0_55 = arith.constant 0 : index
    %184 = vector.load %arg13[%c0_53, %c0_54, %c0_55] : memref<1x1x32xf32, #tpu.memory_space<vmem>>, vector<1x1x32xf32>
    %185 = vector.shape_cast %184 : vector<1x1x32xf32> to vector<1x32xf32>
    %186 = vector.broadcast %185 : vector<1x32xf32> to vector<32x32xf32>
    %187 = arith.addf %183, %186 : vector<32x32xf32>
    %188 = arith.addf %169, %187 : vector<32x32xf32>
    %c0_56 = arith.constant 0 : index
    %c0_57 = arith.constant 0 : index
    %c0_58 = arith.constant 0 : index
    %189 = vector.load %arg14[%c0_56, %c0_57, %c0_58] : memref<1x1x32xf32, #tpu.memory_space<vmem>>, vector<1x1x32xf32>
    %190 = vector.shape_cast %189 : vector<1x1x32xf32> to vector<1x32xf32>
    %c0_59 = arith.constant 0 : index
    %c0_60 = arith.constant 0 : index
    %c0_61 = arith.constant 0 : index
    %191 = vector.load %arg15[%c0_59, %c0_60, %c0_61] : memref<1x1x32xf32, #tpu.memory_space<vmem>>, vector<1x1x32xf32>
    %192 = vector.shape_cast %191 : vector<1x1x32xf32> to vector<1x32xf32>
    %cst_62 = arith.constant dense<0.000000e+00> : vector<32xf32>
    %193 = vector.multi_reduction <add>, %188, %cst_62 [1] : vector<32x32xf32> to vector<32xf32>
    %194 = vector.shape_cast %193 : vector<32xf32> to vector<32x1xf32>
    %cst_63 = arith.constant 3.200000e+01 : f32
    %195 = vector.broadcast %cst_63 : f32 to vector<32x1xf32>
    %196 = arith.divf %194, %195 : vector<32x1xf32>
    %197 = vector.broadcast %196 : vector<32x1xf32> to vector<32x32xf32>
    %198 = arith.subf %188, %197 : vector<32x32xf32>
    %199 = arith.mulf %198, %198 : vector<32x32xf32>
    %cst_64 = arith.constant dense<0.000000e+00> : vector<32xf32>
    %200 = vector.multi_reduction <add>, %199, %cst_64 [1] : vector<32x32xf32> to vector<32xf32>
    %201 = vector.shape_cast %200 : vector<32xf32> to vector<32x1xf32>
    %cst_65 = arith.constant 3.200000e+01 : f32
    %202 = vector.broadcast %cst_65 : f32 to vector<32x1xf32>
    %203 = arith.divf %201, %202 : vector<32x1xf32>
    %cst_66 = arith.constant 9.99999974E-6 : f32
    %204 = vector.broadcast %cst_66 : f32 to vector<32x1xf32>
    %205 = arith.addf %203, %204 : vector<32x1xf32>
    %206 = math.rsqrt %205 : vector<32x1xf32>
    %207 = vector.broadcast %206 : vector<32x1xf32> to vector<32x32xf32>
    %208 = arith.mulf %198, %207 : vector<32x32xf32>
    %209 = vector.broadcast %190 : vector<1x32xf32> to vector<32x32xf32>
    %210 = arith.mulf %208, %209 : vector<32x32xf32>
    %211 = vector.broadcast %192 : vector<1x32xf32> to vector<32x32xf32>
    %212 = arith.addf %210, %211 : vector<32x32xf32>
    %213 = vector.shape_cast %212 : vector<32x32xf32> to vector<2x16x32xf32>
    %c0_67 = arith.constant 0 : index
    %c0_68 = arith.constant 0 : index
    %c0_69 = arith.constant 0 : index
    %c0_70 = arith.constant 0 : index
    %214 = vector.load %arg16[%c0_67, %c0_68, %c0_69, %c0_70] : memref<1x2x16x32xf32, #tpu.memory_space<vmem>>, vector<1x2x16x32xf32>
    %215 = vector.shape_cast %214 : vector<1x2x16x32xf32> to vector<2x16x32xf32>
    %216 = vector.shape_cast %213 : vector<2x16x32xf32> to vector<1x2x16x32xf32>
    tpu.vector_store %arg16[%c0_67, %c0_68, %c0_69, %c0_70], %216 {strides = array<i32>} : memref<1x2x16x32xf32, #tpu.memory_space<vmem>>, vector<1x2x16x32xf32>,
    return
  }
  func.func @transform_0(%arg0: i32, %arg1: i32) -> (i32, i32, i32, i32) {
    %c0_i32 = arith.constant 0 : i32
    %c0_i32_0 = arith.constant 0 : i32
    %c0_i32_1 = arith.constant 0 : i32
    return %arg0, %arg1, %c0_i32, %c0_i32_0 : i32, i32, i32, i32
  }
  func.func @transform_1(%arg0: i32, %arg1: i32) -> (i32, i32, i32, i32) {
    %c0_i32 = arith.constant 0 : i32
    %c0_i32_0 = arith.constant 0 : i32
    %c0_i32_1 = arith.constant 0 : i32
    return %arg0, %arg1, %c0_i32, %c0_i32_0 : i32, i32, i32, i32
  }
  func.func @transform_2(%arg0: i32, %arg1: i32) -> (i32, i32, i32) {
    %c0_i32 = arith.constant 0 : i32
    %c0_i32_0 = arith.constant 0 : i32
    %c0_i32_1 = arith.constant 0 : i32
    return %arg0, %c0_i32, %c0_i32_0 : i32, i32, i32
  }
  func.func @transform_3(%arg0: i32, %arg1: i32) -> (i32, i32, i32) {
    %c0_i32 = arith.constant 0 : i32
    %c0_i32_0 = arith.constant 0 : i32
    %c0_i32_1 = arith.constant 0 : i32
    return %arg0, %c0_i32, %c0_i32_0 : i32, i32, i32
  }
  func.func @transform_4(%arg0: i32, %arg1: i32) -> (i32, i32, i32) {
    %c0_i32 = arith.constant 0 : i32
    %c0_i32_0 = arith.constant 0 : i32
    %c0_i32_1 = arith.constant 0 : i32
    return %arg0, %c0_i32, %c0_i32_0 : i32, i32, i32
  }
  func.func @transform_5(%arg0: i32, %arg1: i32) -> (i32, i32, i32) {
    %c0_i32 = arith.constant 0 : i32
    %c0_i32_0 = arith.constant 0 : i32
    %c0_i32_1 = arith.constant 0 : i32
    return %arg0, %c0_i32, %c0_i32_0 : i32, i32, i32
  }
  func.func @transform_6(%arg0: i32, %arg1: i32) -> (i32, i32, i32) {
    %c0_i32 = arith.constant 0 : i32
    %c0_i32_0 = arith.constant 0 : i32
    %c0_i32_1 = arith.constant 0 : i32
    return %arg0, %c0_i32, %c0_i32_0 : i32, i32, i32
  }
  func.func @transform_7(%arg0: i32, %arg1: i32) -> (i32, i32, i32) {
    %c0_i32 = arith.constant 0 : i32
    %c0_i32_0 = arith.constant 0 : i32
    %c0_i32_1 = arith.constant 0 : i32
    return %arg0, %c0_i32, %c0_i32_0 : i32, i32, i32
  }
  func.func @transform_8(%arg0: i32, %arg1: i32) -> (i32, i32, i32) {
    %c0_i32 = arith.constant 0 : i32
    %c0_i32_0 = arith.constant 0 : i32
    %c0_i32_1 = arith.constant 0 : i32
    return %arg0, %c0_i32, %c0_i32_0 : i32, i32, i32
  }
  func.func @transform_9(%arg0: i32, %arg1: i32) -> (i32, i32, i32) {
    %c0_i32 = arith.constant 0 : i32
    %c0_i32_0 = arith.constant 0 : i32
    %c0_i32_1 = arith.constant 0 : i32
    return %arg0, %c0_i32, %c0_i32_0 : i32, i32, i32
  }
  func.func @transform_10(%arg0: i32, %arg1: i32) -> (i32, i32, i32) {
    %c0_i32 = arith.constant 0 : i32
    %c0_i32_0 = arith.constant 0 : i32
    %c0_i32_1 = arith.constant 0 : i32
    return %arg0, %c0_i32, %c0_i32_0 : i32, i32, i32
  }
  func.func @transform_11(%arg0: i32, %arg1: i32) -> (i32, i32, i32) {
    %c0_i32 = arith.constant 0 : i32
    %c0_i32_0 = arith.constant 0 : i32
    %c0_i32_1 = arith.constant 0 : i32
    return %arg0, %c0_i32, %c0_i32_0 : i32, i32, i32
  }
  func.func @transform_12(%arg0: i32, %arg1: i32) -> (i32, i32, i32) {
    %c0_i32 = arith.constant 0 : i32
    %c0_i32_0 = arith.constant 0 : i32
    %c0_i32_1 = arith.constant 0 : i32
    return %arg0, %c0_i32, %c0_i32_0 : i32, i32, i32
  }
  func.func @transform_13(%arg0: i32, %arg1: i32) -> (i32, i32, i32) {
    %c0_i32 = arith.constant 0 : i32
    %c0_i32_0 = arith.constant 0 : i32
    %c0_i32_1 = arith.constant 0 : i32
    return %arg0, %c0_i32, %c0_i32_0 : i32, i32, i32
  }
  func.func @transform_14(%arg0: i32, %arg1: i32) -> (i32, i32, i32, i32) {
    %c0_i32 = arith.constant 0 : i32
    %c0_i32_0 = arith.constant 0 : i32
    %c0_i32_1 = arith.constant 0 : i32
    return %arg0, %arg1, %c0_i32, %c0_i32_0 : i32, i32, i32, i32
  }
}

</mosaic_0001>

<bundles_post_ra>
// kernel: tpu_custom_call.1
= control target key start
LH: loop header
LB: loop body
LE: loop exit
PB: predicated region body
PF: predicated region fallthrough
CT: control target
= control target key end

     0   :  { %s3694_s0 = inlined_call_operand.vmem [shape: f32[2,2,16,32], index: 0, kind: input, shape index: {}]   ;;  %s3695_s1 = inlined_call_operand.hbm [shape: f32[2,2,1,16], index: 1, kind: input, shape index: {}]   ;;  %s3696_s2 = inlined_call_operand.vmem [shape: bf16[2,32,96], index: 2, kind: input, shape index: {}]   ;;  %s3697_s3 = inlined_call_operand.hbm [shape: f32[2,1,96], index: 3, kind: input, shape index: {}]   ;;  %s3698_s4 = inlined_call_operand.hbm [shape: bf16[2,32,32], index: 4, kind: input, shape index: {}]   ;;  %s3699_s5 = inlined_call_operand.vmem [shape: f32[2,1,32], index: 5, kind: input, shape index: {}]   ;;  %s3700_s6 = inlined_call_operand.vmem [shape: f32[2,1,32], index: 6, kind: input, shape index: {}]   ;;  %s3701_s7 = inlined_call_operand.hbm [shape: f32[2,1,32], index: 7, kind: input, shape index: {}]   ;;  %s3702_s8 = inlined_call_operand.hbm [shape: bf16[2,32,64], index: 8, kind: input, shape index: {}]   ;;  %s3703_s9 = inlined_call_operand.vmem [shape: f32[2,1,64], index: 9, kind: input, shape index: {}]   ;;  %s3704_s10 = inlined_call_operand.vmem [shape: bf16[2,64,32], index: 10, kind: input, shape index: {}]   ;;  %s3705_s11 = inlined_call_operand.vmem [shape: f32[2,1,32], index: 11, kind: input, shape index: {}]   ;;  %s3706_s12 = inlined_call_operand.vmem [shape: f32[2,1,32], index: 12, kind: input, shape index: {}]   ;;  %s3707_s13 = inlined_call_operand.hbm [shape: f32[2,1,32], index: 13, kind: input, shape index: {}]   ;;  %s3708_s14 = inlined_call_operand.hbm [shape: f32[2,2,16,32], index: 14, kind: output, shape index: {}]  }
   0x1   :  { %3721 = sst [smem:[#allocation26_spill]] %s3694_s0 }
   0x2   :  { %3722 = sst [smem:[#allocation27_spill]] %s3695_s1 }
   0x3   :  { %3723 = sst [smem:[#allocation28_spill]] %s3697_s3 }
   0x4   :  { %3724 = sst [smem:[#allocation29_spill]] %s3698_s4 }
   0x5   :  { %3725 = sst [smem:[#allocation30_spill]] %s3699_s5 }
   0x6   :  { %3726 = sst [smem:[#allocation31_spill]] %s3700_s6 }
   0x7   :  { %3727 = sst [smem:[#allocation32_spill]] %s3701_s7 }
   0x8   :  { %3728 = sst [smem:[#allocation33_spill]] %s3703_s9 }
   0x9   :  { %3729 = sst [smem:[#allocation34_spill]] %s3704_s10 }
   0xa   :  { %3730 = sst [smem:[#allocation35_spill]] %s3705_s11 }
   0xb   :  { %3731 = sst [smem:[#allocation36_spill]] %s3706_s12 }
   0xc   :  { %3732 = sst [smem:[#allocation37_spill]] %s3708_s14 }
   0xd   :  { %19 = vsyncpa [#allocation3], 0 }
   0xe   :  { %21 = vsyncpa [#allocation3 + $0x1], 0 }
   0xf   :  { %22 = vsyncpa [#allocation6], 0 }
  0x10   :  { %24 = vsyncpa [#allocation6 + $0x1], 0 }
  0x11   :  { %25 = vsyncpa [#allocation9], 0 }
  0x12   :  { %27 = vsyncpa [#allocation9 + $0x1], 0 }
  0x13   :  { %28 = vsyncpa [#allocation12], 0 }
  0x14   :  { %30 = vsyncpa [#allocation12 + $0x1], 0 }
  0x15   :  { %31 = vsyncpa [#allocation4], 0 }
  0x16   :  { %33 = vsyncpa [#allocation4 + $0x1], 0  ;;  %s3072_s29 = smov 0   ;;  %s3074_s30 = smov 0  }
  0x17   :  { %s3076_s15 = smov 0   ;;  %s3078_s16 = smov 0  }
  0x18   :  { %s3080_s17 = smov 0   ;;  %s3082_s18 = smov 0  }
  0x19 LB: > { %3733 = sst [smem:[#allocation19_spill]] %s2961_s29  ;;  %s3103_s19 = sadd.s32 4294967295, %s2981_s18   ;;  %s2981_s18 = sphi %s3082_s18, %s39_s18   ;;  %s2977_s17 = sphi %s3080_s17, %s3768_s17   ;;  %s2973_s16 = sphi %s3078_s16, %s3767_s16   ;;  %s2969_s15 = sphi %s3076_s15, %s3763_s15   ;;  %s2965_s30 = sphi %s3074_s30, %s3766_s30   ;;  %s2961_s29 = sphi %s3072_s29, %s3765_s29  }
  0x1a   : > { %3734 = sst [smem:[#allocation20_spill]] %s2969_s15  ;;  %s2341_s20 = sadd.s32 4294967294, %s2981_s18  }
  0x1b   : > { %3735 = sst [smem:[#allocation21_spill]] %s2981_s18  ;;  %s51_s21 = sadd.s32 1, %s2977_s17 }
  0x1c   : > { %s88_s22 = sadd.s32 1, %s2969_s15  ;;  %p53_p0 = scmp.ge.s32.totalorder %s51_s21, 2 }
  0x1d   : > { %p95_p1 = scmp.ne.s32.totalorder %s2969_s15, %s2965_s30  ;;  %p96_p2 = scmp.eq.s32.totalorder %s2981_s18, 0 }
  0x1e   : > { %p101_p3 = scmp.ne.s32.totalorder %s2965_s30, %s2961_s29  ;;  %s3770_s21 = smov (%p53_p0, %s51_s21), 0 }
  0x1f   : > { %3736 = sst [smem:[#allocation22_spill]] %s3770_s21  ;;  %p3115_p4 = por %p96_p2, %p95_p1 }
  0x20   : > { %p102_p5 = scmp.eq.s32.totalorder %s3103_s19, 0  ;;  %s83_s24 = ssub.s32 %s2977_s17, %s3770_s21 }
  0x21   : > { %p439_p6 = scmp.eq.s32.totalorder %s3103_s19, 1  ;;  %p86_p7 = scmp.eq.s32.totalorder %s83_s24, 0 }
  0x22   : > { %p3123_p8 = por %p102_p5, %p101_p3  ;;  %p445_p10 = scmp.eq.s32.totalorder %s2341_s20, 1 }
  0x23   : > { %p3127_p9 = por %p439_p6, %p95_p1  ;;  %p2343_p12 = scmp.ge.s32.totalorder %s2981_s18, 2 }
  0x24   : > { %s3132_s27 = scalar_select %p86_p7, %s2969_s15, %s88_s22  }
  0x25   : > { %s3739_s26 = scalar_select %p3127_p9, 1, 0 }
  0x26   : > { %3741 = sst [smem:[#allocation24_spill]] %s3132_s27  ;;  %p3134_p11 = por %p445_p10, %p101_p3 }
  0x27   : > { %3740 = sst [smem:[#allocation23_spill]] %s3739_s26  ;;  %p2487_p13 = scmp.lt.s32.totalorder %s2981_s18, 2 }
  0x28   : > { %s3742_s28 = scalar_select %p3134_p11, 1, 0 }
  0x29   : > { %s3141_s24 = sand.u32 1, %s2969_s15   ;;  %s510_s21 = sand.u32 1, %s2981_s18  }
  0x2a   : > { %3743 = sst [smem:[#allocation25_spill]] %s3742_s28  ;;  %p3146_p0 = pnand %p2487_p13, %p3115_p4 }
  0x2b   : > { %s3745_s3 = sld [smem:[#allocation28_spill]]  ;;  %s513_s26 = scalar_lea.vmem [#allocation5], %s3141_s24 }
  0x2c   : > { %s520_s28 = sshll.u32 %s513_s26, 4  ;;  %s3155_s15 = scalar_lea.sflag [#allocation6], %s510_s21  ;;  %s521_s28 = int_to_ptr.vmem [resolvable:$true] %s520_s28 }
  0x2d   : > { %p2352_p1 = scmp.ge.s32.totalorder %s2981_s18, 1  ;;  %p641_p2 = scmp.lt.s32.totalorder %s2981_s18, 3 }
  0x2e   : > { %s3747_s7 = sld [smem:[#allocation32_spill]]  ;;  %s2345_s18 = sshll.u32 %s2977_s17, 1 }
  0x2f   : > { %p3162_p3 = pnand %p2352_p1, %p641_p2  ;;  %s3748_s1 = sld [smem:[#allocation27_spill]] }
  0x30   : > { %s480_s9 = scalar_lea.sflag [#allocation3], %s3141_s24  ;;  %s2984_s6 = smov 1  }
  0x31   : > { %s516_s27 = scalar_lea.hbm %s3745_s3, %s2977_s17  ;;  %s564_s3 = scalar_lea.vmem [#allocation8], %s3141_s24 }
  0x32   : > { %s518_s14 = sshll.u32 %s516_s27, 4  ;;  %s571_s12 = sshll.u32 %s564_s3, 4  ;;  %s519_s14 = int_to_ptr.hbm [resolvable:$true] %s518_s14  ;;  %s572_s12 = int_to_ptr.vmem [resolvable:$true] %s571_s12 }
  0x33   : > { %2470 = dma.hbm_to_vmem [thread:$0]  (!%p3146_p0), %s519_s14, 16, %s521_s28, %s3155_s15  }
  0x34   : > { %s567_s26 = scalar_lea.hbm %s3747_s7, %s2977_s17  ;;  %s3171_s14 = scalar_lea.sflag [#allocation9], %s510_s21 }
  0x35   : > { %s569_s27 = sshll.u32 %s567_s26, 4  ;;  %s2344_s28 = sshll.u32 %s3141_s24, 1  ;;  %s570_s27 = int_to_ptr.hbm [resolvable:$true] %s569_s27 }
  0x36   : > { %2476 = dma.hbm_to_vmem [thread:$0]  (!%p3146_p0), %s570_s27, 16, %s572_s12, %s3171_s14  }
  0x37   : > { %s489_s20 = scalar_lea.hbm %s3748_s1, %s2345_s18  ;;  %s483_s22 = scalar_lea.vmem [#allocation2], %s2344_s28 }
  0x38   : > { %s492_s26 = sshll.u32 %s483_s22, 4  ;;  %s490_s7 = sshll.u32 %s489_s20, 4  ;;  %s493_s26 = int_to_ptr.vmem [resolvable:$true] %s492_s26  ;;  %s491_s7 = int_to_ptr.hbm [resolvable:$true] %s490_s7 }
  0x39   : > { %s2346_s3 = sshll.u32 %s3141_s24, 4  ;;  %s2983_s21 = smov 16  }
  0x3a   : > { %2467 = dma.hbm_to_vmem [thread:$0]  (!%p3146_p0), %s491_s7, 32, %s493_s26, %s480_s9, %s2983_s21, %s2983_s21, %s2984_s6  }
  0x3b   : > { %s2432_s12 = sshll.u32 %s2977_s17, 4  ;;  %s3749_s4 = sld [smem:[#allocation29_spill]] }
  0x3c   : > { %s531_s11 = scalar_lea.vmem [#allocation7], %s2346_s3  ;;  %s2985_s20 = smov 64  }
  0x3d   : > { %s539_s18 = sshll.u32 %s531_s11, 4  ;;  %s2986_s22 = smov 4   ;;  %s540_s18 = int_to_ptr.vmem [resolvable:$true] %s539_s18 }
  0x3e   : > { %s587_s5 = scalar_lea.hbm %s3702_s8, %s2432_s12  ;;  %s582_s9 = scalar_lea.vmem [#allocation10], %s2346_s3 }
  0x3f   : > { %s590_s26 = sshll.u32 %s582_s9, 4  ;;  %s588_s21 = sshll.u32 %s587_s5, 4  ;;  %s591_s26 = int_to_ptr.vmem [resolvable:$true] %s590_s26  ;;  %s589_s21 = int_to_ptr.hbm [resolvable:$true] %s588_s21 }
  0x40   : > { %2479 = dma.hbm_to_vmem [thread:$0]  (!%p3146_p0), %s589_s21, 256, %s591_s26, %s3171_s14, %s2985_s20, %s2985_s20, %s2986_s22  }
  0x41   : > { %s536_s10 = scalar_lea.hbm %s3749_s4, %s2432_s12  ;;  %s632_s11 = scalar_lea.hbm %s3707_s13, %s2977_s17 }
  0x42   : > { %s537_s28 = sshll.u32 %s536_s10, 4  ;;  %s634_s1 = sshll.u32 %s632_s11, 4  ;;  %s538_s28 = int_to_ptr.hbm [resolvable:$true] %s537_s28  ;;  %s635_s1 = int_to_ptr.hbm [resolvable:$true] %s634_s1 }
  0x43   : > { %2473 = dma.hbm_to_vmem [thread:$0]  (!%p3146_p0), %s538_s28, 256, %s540_s18, %s3155_s15, %s2985_s20, %s2985_s20, %s2986_s22  }
  0x44   : > { %s629_s4 = scalar_lea.vmem [#allocation11], %s3141_s24  ;;  %s627_s15 = scalar_lea.sflag [#allocation12], %s3141_s24 }
  0x45   : > { %s636_s0 = sshll.u32 %s629_s4, 4  ;;  %645 = sbr.rel (%p3162_p3) target bundleno = 2603 (0xa2b), region = 76  ;;  %s637_s0 = int_to_ptr.vmem [resolvable:$true] %s636_s0 }
  0x46   : > { %2482 = dma.hbm_to_vmem [thread:$0]  (!%p3146_p0), %s635_s1, 16, %s637_s0, %s627_s15  }
  0x47   : > { %s3209_s3 = sand.u32 (!%p3162_p3), 1, %s2965_s30  }
  0x48   : > { %s2353_s14 = sshll.u32 (!%p3162_p3), %s3209_s3, 1  ;;  %s648_s12 = scalar_lea.sflag (!%p3162_p3), [#allocation3], %s3209_s3 }
  0x49   : > { %s3213_s18 = scalar_lea.vmem (!%p3162_p3), [#allocation2], %s2353_s14 }
  0x4a   : > { %2940 = dma.done.wait (%p3123_p8), %s648_s12, 32  }
  0x4b   : > { %2942 = vsyncadd (%p3123_p8), %s648_s12, 4294967264  ;;  %s657_s0 = sand.u32 1, %s3103_s19   ;;  %s660_s4 = scalar_lea.vmem [#allocation5], %s3209_s3 }
  0x4c   : > { %s658_s1 = scalar_lea.sflag [#allocation6], %s657_s0 }
  0x4d   : > { %2944 = dma.done.wait (%p3123_p8), %s658_s1, 272  }
  0x4e   : > { %2946 = vsyncadd (%p3123_p8), %s658_s1, 4294967024  ;;  %s2354_s29 = sshll.u32 %s3209_s3, 4  ;;  %s677_s23 = scalar_lea.sflag [#allocation9], %s657_s0 }
  0x4f   : > { %s3226_s24 = scalar_lea.vmem [#allocation7], %s2354_s29  ;;  %s679_s28 = scalar_lea.vmem [#allocation8], %s3209_s3 }
  0x50   : > { %2948 = dma.done.wait (%p3123_p8), %s677_s23, 272  }
  0x51   : > { %2950 = vsyncadd (%p3123_p8), %s677_s23, 4294967024  ;;  %s3233_s19 = scalar_lea.vmem [#allocation10], %s2354_s29  ;;  %s696_s20 = scalar_lea.sflag [#allocation12], %s3209_s3 }
  0x52   : > { %s698_s22 = scalar_lea.vmem [#allocation11], %s3209_s3 }
  0x53   : > { %2952 = dma.done.wait (%p3123_p8), %s696_s20, 16  }
  0x54   : > { %2954 = vsyncadd (%p3123_p8), %s696_s20, 4294967280  ;;  %p802_p4 = scmp.lt.s32.totalorder %s2973_s16, 1  ;;  %s3750_s11 = sld [smem:[#allocation26_spill]]  ;;  %vm866_vm0 = vcmask 261120   ;;  %v2611_v9 = vld [vmem:[%s660_s4] ss:$0 sm:$0xff] }
  0x55   : > { %s2987_s15 = smov 104   ;;  %s2988_s14 = smov 120   ;;  %vm929_vm1 = vcmask 64512   ;;  %v2612_v52 = vld [vmem:[%s3213_s18] ss:$0 sm:$0xff]  ;;  %vm1050_vm2 = vcmask 130048  }
  0x56   : > { %s3243_s6 = scalar_select %p802_p4, %s2973_s16, 1  ;;  %vm1275_vm3 = vcmask 195584  }
  0x57   : > { %s2989_s12 = smov 96   ;;  %s2990_s0 = smov 112  }
  0x58   : > { %s2435_s7 = sshll.u32 %s3243_s6, 4  ;;  %s2434_s5 = sshll.u32 %s3243_s6, 5 }
  0x59   : > { %s817_s21 = scalar_lea.vmem %s3696_s2, %s2435_s7  ;;  %s2991_s1 = smov 64  }
  0x5a   : > { %s3255_s25 = scalar_lea.vmem %s3750_s11, %s2434_s5  ;;  %v2438_v0 = vld [vmem:[%s817_s21 + $0x8] sm:$0xff]  ;;  %v2437_v1 = vld [vmem:[%s817_s21] sm:$0xff]  ;;  %s2993_s4 = smov 16  }
  0x5b   : > { %v840_v2 = vld [vmem:[%s3255_s25] sm:$0xff]  ;;  %v841_v3 = vld [vmem:[%s3255_s25 + $0x8] sm:$0xff]  ;;  %879 = vmatpush.bf16.msra.mxu0 %v2438_v0  ;;  %2448 = vmatpush.bf16.msra.mxu1 %v2438_v0  ;;  %v842_v5 = vld [vmem:[%s3255_s25 + $0x10] sm:$0xff]  ;;  %s2994_s29 = smov 24   ;;  %s3751_s20 = sld [smem:[#allocation30_spill]] }
  0x5c   : > { %v844_v4 = vpack.c.bf16 %v841_v3, %v840_v2  ;;  %v843_v6 = vld [vmem:[%s3255_s25 + $0x18] sm:$0xff]  ;;  %s3752_s21 = sld [smem:[#allocation31_spill]] }
  0x5d   : > { %v845_v7 = vpack.c.bf16 %v843_v6, %v842_v5  ;;  %s3753_s11 = sld [smem:[#allocation33_spill]] }
  0x5e   : > { %s3756_s26 = sld [smem:[#allocation36_spill]] }
  0x5f   : > { %880 = vmatpush.bf16.msra.mxu0 %v2437_v1  ;;  %2449 = vmatpush.bf16.msra.mxu1 %v2437_v1 }
  0x61   : > { %s820_s7 = scalar_lea.vmem %s3751_s20, %s3243_s6 }
  0x62   : > { %2371 = vmatmul.msk.bf16.vlgmr.msra.gmra.mxu0 %vm866_vm0, %v844_v4  ;;  %2372 = vmatmul.msk.bf16.vlgmr.msra.gmra.mxu1 %vm866_vm0, %v845_v7  ;;  %s823_s27 = scalar_lea.vmem %s3752_s21, %s3243_s6 }
  0xdf   : > { %v882_v8 = vpop.f32.mrf.mxu0  ;;  %v887_v45 = vpop.f32.mrf.mxu1 }
  0xe0   : > { %v883_v10 = vadd.f32 %v2611_v9, %v882_v8  ;;  %v3287_v47 = vadd.f32 %v2611_v9, %v887_v45 }
  0xe2   : > { %v914_v13 = vpack.c.bf16 %v883_v10, %v883_v10 }
  0xe4   : > { %v924_v16 = vunpack.c.l.b16 %v914_v13 }
  0xe7   : > { %v884_v11 = vpop.f32.mrf.mxu0  ;;  %v889_v46 = vpop.f32.mrf.mxu1 }
  0xe8   : > { %v885_v12 = vadd.f32 %v2611_v9, %v884_v11  ;;  %v3289_v48 = vadd.f32 %v2611_v9, %v889_v46 }
  0xea   : > { %v2561_v14 = vpack.i.bf16 %v885_v12, %v883_v10  ;;  %v915_v15 = vpack.c.bf16 %v885_v12, %v885_v12  ;;  %v2566_v49 = vpack.i.bf16 %v3289_v48, %v3287_v47 }
  0xec   : > { %2562 = vrot.lane.b32.xlu1 %v2561_v14, %s2987_s15  ;;  %2552 = vrot.lane.b32.xlu0 %v2561_v14, %s2988_s14  ;;  %v925_v17 = vunpack.c.l.b16 %v915_v15 }
  0xee   : > { %v3267_v18 = vpack.c.b16 %v925_v17, %v924_v16 }
  0xf0   : > { %927 = vrot.lane.b32.xlu2 %v3267_v18, %s2989_s12 }
  0xf4   : > { %2557 = vrot.lane.b32.xlu0 %v2561_v14, %s2990_s0 }
 0x14a   : > { %v928_v19 = vpop.permute.xlu2 %927 }
 0x14b   : > { %v934_v20 = vsel %vm929_vm1, %v928_v19, 0 }
 0x14c   : > { %943 = vmatpush.bf16.xpose.msrb.mxu1 %v934_v20 }
 0x153   : > { %2373 = vmatmul.msk.bf16.vlgmr.msrb.gmra.mxu1 %vm929_vm1, %v3267_v18 }
 0x15e   : > { %v2563_v21 = vpop.permute.xlu1 %2562  ;;  %v2553_v22 = vpop.permute.xlu0 %2552 }
 0x15f   : > { %v2565_v23 = vunpack.i.h.bf16 %v2563_v21  ;;  %v2564_v24 = vunpack.i.l.bf16 %v2563_v21  ;;  %v2555_v25 = vunpack.i.h.bf16 %v2553_v22  ;;  %v2554_v26 = vunpack.i.l.bf16 %v2553_v22 }
 0x161   : > { %v921_v27 = vpack.c.bf16 %v2565_v23, %v2565_v23  ;;  %v920_v28 = vpack.c.bf16 %v2564_v24, %v2564_v24  ;;  %v917_v29 = vpack.c.bf16 %v2555_v25, %v2555_v25  ;;  %v916_v30 = vpack.c.bf16 %v2554_v26, %v2554_v26 }
 0x163   : > { %v1007_v31 = vunpack.c.l.b16 %v921_v27  ;;  %v1006_v32 = vunpack.c.l.b16 %v920_v28  ;;  %v953_v33 = vunpack.c.l.b16 %v917_v29  ;;  %v952_v34 = vunpack.c.l.b16 %v916_v30 }
 0x165   : > { %v3275_v35 = vpack.c.b16 %v1007_v31, %v1006_v32  ;;  %v3277_v36 = vpack.c.b16 %v953_v33, %v952_v34 }
 0x166   : > { %v2558_v37 = vpop.permute.xlu0 %2557 }
 0x167   : > { %v2560_v38 = vunpack.i.h.bf16 %v2558_v37  ;;  %v2559_v39 = vunpack.i.l.bf16 %v2558_v37  ;;  %1009 = vrot.lane.b32.xlu0 %v3275_v35, %s2989_s12  ;;  %955 = vrot.lane.b32.xlu1 %v3277_v36, %s2989_s12 }
 0x169   : > { %v919_v40 = vpack.c.bf16 %v2560_v38, %v2560_v38  ;;  %v918_v41 = vpack.c.bf16 %v2559_v39, %v2559_v39 }
 0x16b   : > { %v980_v42 = vunpack.c.l.b16 %v919_v40  ;;  %v979_v43 = vunpack.c.l.b16 %v918_v41 }
 0x16d   : > { %v3283_v44 = vpack.c.b16 %v980_v42, %v979_v43 }
 0x16f   : > { %982 = vrot.lane.b32.xlu2 %v3283_v44, %s2989_s12  ;;  %2567 = vrot.lane.b32.xlu0 %v2566_v49, %s2988_s14 }
 0x1c9   : > { %v983_v50 = vpop.permute.xlu2 %982 }
 0x1ca   : > { %v988_v51 = vsel %vm929_vm1, %v983_v50, 0 }
 0x1cb   : > { %997 = vmatpush.bf16.xpose.msra.mxu3 %v988_v51 }
 0x1d0   : > { %v945_v53 = vpop.f32.mrf.mxu1 }
 0x1d1   : > { %v1031_v54 = vmul.f32 0.35355338, %v945_v53 }
 0x1d2   : > { %2375 = vmatmul.msk.bf16.vlgmr.msra.gmra.mxu3 %vm929_vm1, %v3283_v44 }
 0x1d3   : > { %v3298_v55 = vadd.f32 %v2612_v52, %v1031_v54 }
 0x1d5   : > { %v1051_v56 = vsel %vm1050_vm2, %v3298_v55, -inf }
 0x1d6   : > { %1052 = vmax.xlane.f32.xlu1 %v1051_v56 }
 0x1d8   : > { %v947_v57 = vpop.f32.mrf.mxu1 }
 0x1d9   : > { %v1032_v58 = vmul.f32 0.35355338, %v947_v57  ;;  %v1010_v59 = vpop.permute.xlu0 %1009  ;;  %v956_v60 = vpop.permute.xlu1 %955 }
 0x1da   : > { %v1015_v61 = vsel %vm929_vm1, %v1010_v59, 0  ;;  %v961_v62 = vsel %vm929_vm1, %v956_v60, 0 }
 0x1db   : > { %970 = vmatpush.bf16.xpose.msra.mxu2 %v961_v62  ;;  %1024 = vmatpush.bf16.xpose.msra.mxu1 %v1015_v61  ;;  %v3304_v63 = vadd.f32 %v2612_v52, %v1032_v58 }
 0x1dd   : > { %v1054_v0 = vsel %vm1050_vm2, %v3304_v63, -inf }
 0x1de   : > { %1055 = vmax.xlane.f32.xlu2 %v1054_v0 }
 0x1e1   : > { %v2568_v26 = vpop.permute.xlu0 %2567 }
 0x1e2   : > { %2374 = vmatmul.msk.bf16.vlgmr.msra.gmra.mxu2 %vm929_vm1, %v3277_v36  ;;  %2376 = vmatmul.msk.bf16.vlgmr.msra.gmra.mxu1 %vm929_vm1, %v3275_v35 }
 0x249   : > { %v3325_v29 = vpop.xlane.xlu1 %1052 }
 0x251   : > { %v3327_v31 = vpop.xlane.xlu2 %1055 }
 0x255   : > { %v999_v1 = vpop.f32.mrf.mxu3 }
 0x256   : > { %v1035_v2 = vmul.f32 0.35355338, %v999_v1 }
 0x258   : > { %v1046_v3 = vadd.f32 %v2612_v52, %v1035_v2  ;;  %v2570_v2 = vunpack.i.h.bf16 %v2568_v26 }
 0x25a   : > { %v1063_v4 = vsel %vm1050_vm2, %v1046_v3, -inf }
 0x25b   : > { %1064 = vmax.xlane.f32.xlu0 %v1063_v4 }
 0x25d   : > { %v1001_v22 = vpop.f32.mrf.mxu3 }
 0x25e   : > { %v1036_v23 = vmul.f32 0.35355338, %v1001_v22 }
 0x25f   : > { %v1026_v5 = vpop.f32.mrf.mxu1 }
 0x260   : > { %v1037_v6 = vmul.f32 0.35355338, %v1026_v5  ;;  %v3321_v24 = vadd.f32 %v2612_v52, %v1036_v23 }
 0x262   : > { %v1048_v7 = vadd.f32 %v2612_v52, %v1037_v6  ;;  %v1066_v25 = vsel %vm1050_vm2, %v3321_v24, -inf }
 0x264   : > { %v1069_v8 = vsel %vm1050_vm2, %v1048_v7, -inf }
 0x265   : > { %v972_v9 = vpop.f32.mrf.mxu2  ;;  %1070 = vmax.xlane.f32.xlu1 %v1069_v8 }
 0x266   : > { %v1033_v10 = vmul.f32 0.35355338, %v972_v9  ;;  %v1301_v9 = vpack.c.bf16 %v2570_v2, %v2570_v2 }
 0x267   : > { %v1028_v11 = vpop.f32.mrf.mxu1 }
 0x268   : > { %v1038_v12 = vmul.f32 0.35355338, %v1028_v11  ;;  %v1044_v13 = vadd.f32 %v2612_v52, %v1033_v10 }
 0x26a   : > { %v1049_v14 = vadd.f32 %v2612_v52, %v1038_v12  ;;  %v1057_v15 = vsel %vm1050_vm2, %v1044_v13, -inf }
 0x26c   : > { %v1072_v16 = vsel %vm1050_vm2, %v1049_v14, -inf }
 0x26d   : > { %v974_v17 = vpop.f32.mrf.mxu2  ;;  %1058 = vmax.xlane.f32.xlu1 %v1057_v15  ;;  %1073 = vmax.xlane.f32.xlu2 %v1072_v16 }
 0x26e   : > { %v1034_v19 = vmul.f32 0.35355338, %v974_v17 }
 0x26f   : > { %1177 = vrot.lane.b32.xlu0 %v3277_v36, %s2991_s1 }
 0x270   : > { %v1045_v20 = vadd.f32 %v2612_v52, %v1034_v19 }
 0x272   : > { %v1060_v21 = vsel %vm1050_vm2, %v1045_v20, -inf }
 0x275   : > { %1061 = vmax.xlane.f32.xlu2 %v1060_v21  ;;  %v1075_v21 = vsub.f32 %v3298_v55, %v3325_v29  ;;  %v1298_v29 = vpack.c.bf16 %v3287_v47, %v3287_v47 }
 0x277   : > { %v1083_v23 = vmul.f32 1.442695, %v1075_v21 }
 0x286   : > { %2572 = vrot.lane.b32.xlu1 %v2566_v49, %s2990_s0  ;;  %s3754_s0 = sld [smem:[#allocation34_spill]] }
 0x28d   : > { %2577 = vrot.lane.b32.xlu2 %v2566_v49, %s2987_s15 }
 0x2b6   : > { %1067 = vmax.xlane.f32.xlu2 %v1066_v25 }
 0x2ce   : > { %v1065_v27 = vpop.xlane.xlu0 %1064 }
 0x2cf   : > { %v1079_v28 = vsub.f32 %v1046_v3, %v1065_v27  ;;  %v2569_v3 = vunpack.i.l.bf16 %v2568_v26 }
 0x2d1   : > { %v1091_v30 = vmul.f32 1.442695, %v1079_v28  ;;  %v1300_v10 = vpack.c.bf16 %v2569_v3, %v2569_v3 }
 0x2d3   : > { %2621 = vpow2.f32 %v1091_v30  ;;  %v1335_v15 = vunpack.c.l.b16 %v1300_v10 }
 0x2d8   : > { %v1071_v32 = vpop.xlane.xlu1 %1070 }
 0x2d9   : > { %v3329_v33 = vpop.eup %2621  ;;  %v1081_v34 = vsub.f32 %v1048_v7, %v1071_v32  ;;  %v1308_v32 = vunpack.c.l.b16 %v1298_v29 }
 0x2da   : > { %v1111_v36 = vsel %vm1050_vm2, %v3329_v33, 0.0 }
 0x2db   : > { %v1095_v37 = vmul.f32 1.442695, %v1081_v34  ;;  %1112 = vadd.xlane.f32.xlu2 %v1111_v36 }
 0x2dd   : > { %2623 = vpow2.f32 %v1095_v37 }
 0x2e0   : > { %v1059_v38 = vpop.xlane.xlu1 %1058  ;;  %v1074_v39 = vpop.xlane.xlu2 %1073 }
 0x2e1   : > { %v1077_v40 = vsub.f32 %v1044_v13, %v1059_v38  ;;  %v1082_v41 = vsub.f32 %v1049_v14, %v1074_v39  ;;  %v1178_v42 = vpop.permute.xlu0 %1177  ;;  %v1336_v14 = vunpack.c.l.b16 %v1301_v9 }
 0x2e2   : > { %1190 = vmatpush.bf16.msrb.mxu3 %v1178_v42 }
 0x2e3   : > { %v3333_v43 = vpop.eup %2623  ;;  %v1087_v45 = vmul.f32 1.442695, %v1077_v40  ;;  %v1097_v46 = vmul.f32 1.442695, %v1082_v41  ;;  %v3357_v17 = vpack.c.b16 %v1336_v14, %v1335_v15 }
 0x2e4   : > { %v1117_v49 = vsel %vm1050_vm2, %v3333_v43, 0.0 }
 0x2e5   : > { %2625 = vpow2.f32 %v1087_v45  ;;  %1118 = vadd.xlane.f32.xlu1 %v1117_v49 }
 0x2e6   : > { %2627 = vpow2.f32 %v1097_v46 }
 0x2e8   : > { %v1062_v50 = vpop.xlane.xlu2 %1061 }
 0x2e9   : > { %v1078_v51 = vsub.f32 %v1045_v20, %v1062_v50 }
 0x2eb   : > { %v3337_v52 = vpop.eup %2625  ;;  %v1089_v53 = vmul.f32 1.442695, %v1078_v51 }
 0x2ec   : > { %v3339_v54 = vpop.eup %2627  ;;  %v1105_v56 = vsel %vm1050_vm2, %v3337_v52, 0.0 }
 0x2ed   : > { %2629 = vpow2.f32 %v1089_v53  ;;  %1106 = vadd.xlane.f32.xlu0 %v1105_v56  ;;  %v1120_v57 = vsel %vm1050_vm2, %v3339_v54, 0.0 }
 0x2ee   : > { %1121 = vadd.xlane.f32.xlu2 %v1120_v57 }
 0x2f0   : > { %v2578_v4 = vpop.permute.xlu2 %2577 }
 0x2f1   : > { %v2580_v5 = vunpack.i.h.bf16 %v2578_v4  ;;  %v2579_v6 = vunpack.i.l.bf16 %v2578_v4 }
 0x2f3   : > { %v3345_v58 = vpop.eup %2629  ;;  %v1305_v11 = vpack.c.bf16 %v2580_v5, %v2580_v5  ;;  %v1304_v12 = vpack.c.bf16 %v2579_v6, %v2579_v6 }
 0x2f4   : > { %v1108_v59 = vsel %vm1050_vm2, %v3345_v58, 0.0 }
 0x2f5   : > { %1109 = vadd.xlane.f32.xlu1 %v1108_v59  ;;  %v1390_v16 = vunpack.c.l.b16 %v1305_v11 }
 0x2f8   : > { %v2573_v60 = vpop.permute.xlu1 %2572 }
 0x2f9   : > { %v2575_v61 = vunpack.i.h.bf16 %v2573_v60  ;;  %v2574_v62 = vunpack.i.l.bf16 %v2573_v60 }
 0x2fb   : > { %v1303_v0 = vpack.c.bf16 %v2575_v61, %v2575_v61  ;;  %v1302_v1 = vpack.c.bf16 %v2574_v62, %v2574_v62 }
 0x2fd   : > { %v1363_v7 = vunpack.c.l.b16 %v1303_v0  ;;  %v1362_v8 = vunpack.c.l.b16 %v1302_v1 }
 0x2ff   : > { %v3353_v13 = vpack.c.b16 %v1363_v7, %v1362_v8 }
 0x301   : > { %1227 = vrot.lane.b32.xlu0 %v3275_v35, %s2991_s1  ;;  %v1389_v35 = vunpack.c.l.b16 %v1304_v12 }
 0x303   : > { %v3361_v19 = vpack.c.b16 %v1390_v16, %v1389_v35 }
 0x306   : > { %1202 = vrot.lane.b32.xlu2 %v3283_v44, %s2991_s1  ;;  %v1076_v44 = vsub.f32 %v3304_v63, %v3327_v31  ;;  %v1299_v31 = vpack.c.bf16 %v3289_v48, %v3289_v48 }
 0x308   : > { %v1085_v20 = vmul.f32 1.442695, %v1076_v44  ;;  %v1309_v34 = vunpack.c.l.b16 %v1299_v31 }
 0x309   : > { %1365 = vrot.lane.b32.xlu0 %v3353_v13, %s2989_s12 }
 0x30a   : > { %2631 = vpow2.f32 %v1085_v20  ;;  %v3388_v36 = vpack.c.b16 %v1309_v34, %v1308_v32 }
 0x30b   : > { %2633 = vpow2.f32 %v1083_v23 }
 0x30e   : > { %1338 = vrot.lane.b32.xlu1 %v3357_v17, %s2989_s12 }
 0x310   : > { %v3370_v26 = vpop.eup %2631 }
 0x311   : > { %1392 = vrot.lane.b32.xlu0 %v3361_v19, %s2989_s12  ;;  %v1102_v28 = vsel %vm1050_vm2, %v3370_v26, 0.0  ;;  %v3374_v30 = vpop.eup %2633 }
 0x312   : > { %v1099_v55 = vsel %vm1050_vm2, %v3374_v30, 0.0 }
 0x329   : > { %v1068_v22 = vpop.xlane.xlu2 %1067 }
 0x32a   : > { %v1080_v25 = vsub.f32 %v3321_v24, %v1068_v22 }
 0x32c   : > { %v1093_v27 = vmul.f32 1.442695, %v1080_v25 }
 0x32e   : > { %2635 = vpow2.f32 %v1093_v27 }
 0x32f   : > { %1103 = vadd.xlane.f32.xlu2 %v1102_v28 }
 0x334   : > { %v3376_v63 = vpop.eup %2635 }
 0x335   : > { %v1114_v24 = vsel %vm1050_vm2, %v3376_v63, 0.0 }
 0x338   : > { %1100 = vadd.xlane.f32.xlu1 %v1099_v55 }
 0x33b   : > { %1115 = vadd.xlane.f32.xlu0 %v1114_v24 }
 0x34e   : > { %v1113_v37 = vpop.xlane.xlu2 %1112 }
 0x34f   : > { %1152 = vrot.lane.b32.xlu0 %v3267_v18, %s2991_s1 }
 0x357   : > { %1311 = vrot.lane.b32.xlu0 %v3388_v36, %s2989_s12 }
 0x358   : > { %v1119_v38 = vpop.xlane.xlu1 %1118 }
 0x359   : > { %2637 = vrcp.f32 %v1119_v38 }
 0x35f   : > { %v2638_v47 = vpop.eup %2637 }
 0x360   : > { %v1107_v39 = vpop.xlane.xlu0 %1106  ;;  %v1137_v46 = vmul.f32 %v2638_v47, %v3333_v43 }
 0x361   : > { %v1122_v40 = vpop.xlane.xlu2 %1121 }
 0x362   : > { %2639 = vrcp.f32 %v1122_v40  ;;  %v1145_v53 = vpack.c.bf16 %v1137_v46, %v1137_v46  ;;  %v2613_v40 = vld [vmem:[%s3213_s18 + $0x1] ss:$0 sm:$0xff]  ;;  %s2992_s18 = smov 8  }
 0x363   : > { %2641 = vrcp.f32 %v1107_v39 }
 0x364   : > { %v1224_v61 = vunpack.c.l.b16 %v1145_v53 }
 0x368   : > { %v2640_v41 = vpop.eup %2639  ;;  %v1110_v48 = vpop.xlane.xlu1 %1109 }
 0x369   : > { %v2642_v42 = vpop.eup %2641  ;;  %v1138_v18 = vmul.f32 %v2640_v41, %v3339_v54  ;;  %2643 = vrcp.f32 %v1110_v48  ;;  %v1203_v45 = vpop.permute.xlu2 %1202 }
 0x36a   : > { %1215 = vmatpush.bf16.msrb.mxu0 %v1203_v45  ;;  %v1133_v49 = vmul.f32 %v2642_v42, %v3337_v52  ;;  %2645 = vrcp.f32 %v1113_v37 }
 0x36b   : > { %v1146_v50 = vpack.c.bf16 %v1138_v18, %v1138_v18 }
 0x36c   : > { %v1141_v56 = vpack.c.bf16 %v1133_v49, %v1133_v49 }
 0x36d   : > { %v1225_v59 = vunpack.c.l.b16 %v1146_v50 }
 0x36e   : > { %v1174_v0 = vunpack.c.l.b16 %v1141_v56 }
 0x36f   : > { %v2644_v51 = vpop.eup %2643  ;;  %v1226_v54 = vpack.c.b16 %v1225_v59, %v1224_v61 }
 0x370   : > { %v1134_v57 = vmul.f32 %v2644_v51, %v3345_v58  ;;  %v2646_v9 = vpop.eup %2645 }
 0x371   : > { %v1135_v10 = vmul.f32 %v2646_v9, %v3329_v33 }
 0x372   : > { %v1142_v60 = vpack.c.bf16 %v1134_v57, %v1134_v57 }
 0x373   : > { %v1228_v62 = vpop.permute.xlu0 %1227  ;;  %v1143_v15 = vpack.c.bf16 %v1135_v10, %v1135_v10 }
 0x374   : > { %v1175_v1 = vunpack.c.l.b16 %v1142_v60  ;;  %1240 = vmatpush.bf16.msrb.mxu1 %v1228_v62 }
 0x375   : > { %v1199_v21 = vunpack.c.l.b16 %v1143_v15 }
 0x376   : > { %v1176_v2 = vpack.c.b16 %v1175_v1, %v1174_v0 }
 0x377   : > { %2380 = vmatmul.msk.bf16.vlgmr.msrb.gmra.mxu1 %vm1050_vm2, %v1226_v54 }
 0x378   : > { %2378 = vmatmul.msk.bf16.vlgmr.msrb.gmra.mxu3 %vm1050_vm2, %v1176_v2 }
 0x37b   : > { %v1366_v43 = vpop.permute.xlu0 %1365 }
 0x37c   : > { %v1371_v52 = vsel %vm929_vm1, %v1366_v43, 0 }
 0x37d   : > { %1380 = vmatpush.bf16.xpose.msra.mxu0 %v1371_v52 }
 0x380   : > { %v1339_v3 = vpop.permute.xlu1 %1338 }
 0x381   : > { %v1344_v58 = vsel %vm929_vm1, %v1339_v3, 0 }
 0x382   : > { %1353 = vmatpush.bf16.xpose.msra.mxu3 %v1344_v58 }
 0x383   : > { %v1393_v4 = vpop.permute.xlu0 %1392 }
 0x384   : > { %v1398_v5 = vsel %vm929_vm1, %v1393_v4, 0 }
 0x385   : > { %1407 = vmatpush.bf16.xpose.msra.mxu1 %v1398_v5 }
 0x389   : > { %2382 = vmatmul.msk.bf16.vlgmr.msra.gmra.mxu3 %vm929_vm1, %v3357_v17 }
 0x38c   : > { %2384 = vmatmul.msk.bf16.vlgmr.msra.gmra.mxu1 %vm929_vm1, %v3361_v19 }
 0x3a2   : > { %v1104_v7 = vpop.xlane.xlu2 %1103 }
 0x3ab   : > { %v1101_v6 = vpop.xlane.xlu1 %1100 }
 0x3ac   : > { %2647 = vrcp.f32 %v1101_v6 }
 0x3ae   : > { %v1116_v8 = vpop.xlane.xlu0 %1115 }
 0x3af   : > { %2649 = vrcp.f32 %v1116_v8 }
 0x3b0   : > { %2651 = vrcp.f32 %v1104_v7 }
 0x3b2   : > { %v2648_v11 = vpop.eup %2647 }
 0x3b3   : > { %v1131_v35 = vmul.f32 %v2648_v11, %v3374_v30 }
 0x3b5   : > { %v2650_v12 = vpop.eup %2649  ;;  %v1139_v23 = vpack.c.bf16 %v1131_v35, %v1131_v35 }
 0x3b6   : > { %v2652_v14 = vpop.eup %2651  ;;  %v1136_v16 = vmul.f32 %v2650_v12, %v3376_v63 }
 0x3b7   : > { %v1132_v20 = vmul.f32 %v2652_v14, %v3370_v26  ;;  %v1149_v28 = vunpack.c.l.b16 %v1139_v23 }
 0x3b8   : > { %v1144_v44 = vpack.c.bf16 %v1136_v16, %v1136_v16 }
 0x3b9   : > { %v1140_v27 = vpack.c.bf16 %v1132_v20, %v1132_v20 }
 0x3ba   : > { %v1200_v22 = vunpack.c.l.b16 %v1144_v44 }
 0x3bb   : > { %v1150_v33 = vunpack.c.l.b16 %v1140_v27 }
 0x3bc   : > { %v1201_v25 = vpack.c.b16 %v1200_v22, %v1199_v21 }
 0x3bd   : > { %v1151_v24 = vpack.c.b16 %v1150_v33, %v1149_v28 }
 0x3be   : > { %2379 = vmatmul.msk.bf16.vlgmr.msrb.gmra.mxu0 %vm1050_vm2, %v1201_v25 }
 0x3c1   : > { %v1153_v55 = vpop.permute.xlu0 %1152 }
 0x3c2   : > { %1165 = vmatpush.bf16.msrb.mxu2 %v1153_v55 }
 0x3c5   : > { %2377 = vmatmul.msk.bf16.vlgmr.msrb.gmra.mxu2 %vm1050_vm2, %v1151_v24 }
 0x3c9   : > { %v1312_v63 = vpop.permute.xlu0 %1311 }
 0x3ca   : > { %v1317_v30 = vsel %vm929_vm1, %v1312_v63, 0 }
 0x3cb   : > { %1326 = vmatpush.bf16.xpose.msra.mxu2 %v1317_v30 }
 0x3ce   : > { %2383 = vmatmul.msk.bf16.vlgmr.msra.gmra.mxu0 %vm929_vm1, %v3353_v13 }
 0x3d5   : > { %2381 = vmatmul.msk.bf16.vlgmr.msra.gmra.mxu2 %vm929_vm1, %v3388_v36 }
 0x3f4   : > { %v3416_v26 = vpop.f32.mrf.mxu1 }
 0x3fb   : > { %v3418_v29 = vpop.f32.mrf.mxu3 }
 0x3fc   : > { %v3420_v31 = vpop.f32.mrf.mxu1 }
 0x3fd   : > { %v2591_v32 = vpack.i.bf16 %v3420_v31, %v3416_v26 }
 0x403   : > { %v3424_v34 = vpop.f32.mrf.mxu3 }
 0x404   : > { %v2581_v37 = vpack.i.bf16 %v3424_v34, %v3418_v29 }
 0x409   : > { %v1409_v50 = vpop.f32.mrf.mxu1 }
 0x40a   : > { %v1420_v53 = vmul.f32 0.35355338, %v1409_v50 }
 0x40c   : > { %v1355_v38 = vpop.f32.mrf.mxu3  ;;  %v1431_v61 = vadd.f32 %v2613_v40, %v1420_v53 }
 0x40d   : > { %v1416_v39 = vmul.f32 0.35355338, %v1355_v38 }
 0x40e   : > { %v1451_v2 = vsel %vm1050_vm2, %v1431_v61, -inf }
 0x40f   : > { %v1427_v47 = vadd.f32 %v2613_v40, %v1416_v39 }
 0x411   : > { %v1439_v41 = vsel %vm1050_vm2, %v1427_v47, -inf  ;;  %v1411_v4 = vpop.f32.mrf.mxu1 }
 0x412   : > { %1440 = vmax.xlane.f32.xlu0 %v1439_v41  ;;  %v1421_v5 = vmul.f32 0.35355338, %v1411_v4 }
 0x414   : > { %v1357_v62 = vpop.f32.mrf.mxu3  ;;  %v1432_v11 = vadd.f32 %v2613_v40, %v1421_v5 }
 0x415   : > { %v1417_v1 = vmul.f32 0.35355338, %v1357_v62 }
 0x416   : > { %v1454_v14 = vsel %vm1050_vm2, %v1432_v11, -inf }
 0x417   : > { %v1428_v3 = vadd.f32 %v2613_v40, %v1417_v1 }
 0x419   : > { %v1442_v7 = vsel %vm1050_vm2, %v1428_v3, -inf }
 0x43b   : > { %v3430_v48 = vpop.f32.mrf.mxu0 }
 0x443   : > { %v3432_v42 = vpop.f32.mrf.mxu0 }
 0x444   : > { %v2586_v18 = vpack.i.bf16 %v3432_v42, %v3430_v48 }
 0x448   : > { %v3436_v45 = vpop.f32.mrf.mxu2 }
 0x44b   : > { %v1382_v46 = vpop.f32.mrf.mxu0 }
 0x44c   : > { %v1418_v49 = vmul.f32 0.35355338, %v1382_v46 }
 0x44e   : > { %v1429_v51 = vadd.f32 %v2613_v40, %v1418_v49 }
 0x450   : > { %v3438_v56 = vpop.f32.mrf.mxu2  ;;  %v1445_v57 = vsel %vm1050_vm2, %v1429_v51, -inf }
 0x451   : > { %1446 = vmax.xlane.f32.xlu2 %v1445_v57 }
 0x453   : > { %v1384_v59 = vpop.f32.mrf.mxu0 }
 0x454   : > { %v1419_v60 = vmul.f32 0.35355338, %v1384_v59 }
 0x456   : > { %v1430_v0 = vadd.f32 %v2613_v40, %v1419_v60 }
 0x458   : > { %v1328_v54 = vpop.f32.mrf.mxu2  ;;  %v1448_v43 = vsel %vm1050_vm2, %v1430_v0, -inf }
 0x459   : > { %v1414_v52 = vmul.f32 0.35355338, %v1328_v54  ;;  %1452 = vmax.xlane.f32.xlu2 %v1451_v2  ;;  %1449 = vmax.xlane.f32.xlu1 %v1448_v43 }
 0x45b   : > { %v3443_v58 = vadd.f32 %v2613_v40, %v1414_v52 }
 0x45d   : > { %v1433_v8 = vsel %vm1050_vm2, %v3443_v58, -inf }
 0x460   : > { %v1330_v6 = vpop.f32.mrf.mxu2 }
 0x461   : > { %v1415_v9 = vmul.f32 0.35355338, %v1330_v6  ;;  %1443 = vmax.xlane.f32.xlu1 %v1442_v7  ;;  %1434 = vmax.xlane.f32.xlu2 %v1433_v8 }
 0x463   : > { %v3448_v10 = vadd.f32 %v2613_v40, %v1415_v9 }
 0x465   : > { %v1436_v12 = vsel %vm1050_vm2, %v3448_v10, -inf }
 0x466   : > { %1437 = vmax.xlane.f32.xlu0 %v1436_v12 }
 0x469   : > { %1455 = vmax.xlane.f32.xlu1 %v1454_v14 }
 0x485   : > { %v1441_v15 = vpop.xlane.xlu0 %1440 }
 0x486   : > { %v1459_v16 = vsub.f32 %v1427_v47, %v1441_v15 }
 0x488   : > { %v1469_v35 = vmul.f32 1.442695, %v1459_v16 }
 0x48a   : > { %2653 = vpow2.f32 %v1469_v35 }
 0x490   : > { %v3453_v44 = vpop.eup %2653 }
 0x491   : > { %v1487_v20 = vsel %vm1050_vm2, %v3453_v44, 0.0 }
 0x492   : > { %1488 = vadd.xlane.f32.xlu1 %v1487_v20 }
 0x4c4   : > { %v1447_v21 = vpop.xlane.xlu2 %1446 }
 0x4c5   : > { %v1461_v22 = vsub.f32 %v1429_v51, %v1447_v21 }
 0x4c7   : > { %v1473_v23 = vmul.f32 1.442695, %v1461_v22 }
 0x4c9   : > { %2655 = vpow2.f32 %v1473_v23 }
 0x4cc   : > { %v1453_v25 = vpop.xlane.xlu2 %1452  ;;  %v1450_v27 = vpop.xlane.xlu1 %1449 }
 0x4cd   : > { %v1463_v28 = vsub.f32 %v1431_v61, %v1453_v25  ;;  %v1462_v33 = vsub.f32 %v1430_v0, %v1450_v27 }
 0x4cf   : > { %v2656_v55 = vpop.eup %2655  ;;  %v1477_v24 = vmul.f32 1.442695, %v1463_v28  ;;  %v1475_v63 = vmul.f32 1.442695, %v1462_v33 }
 0x4d0   : > { %v1493_v30 = vsel %vm1050_vm2, %v2656_v55, 0.0 }
 0x4d1   : > { %2657 = vpow2.f32 %v1477_v24  ;;  %1494 = vadd.xlane.f32.xlu0 %v1493_v30  ;;  %v2440_v30 = vld [vmem:[%s3226_s24 + $0x8] sm:$0xff] }
 0x4d2   : > { %2659 = vpow2.f32 %v1475_v63 }
 0x4d4   : > { %v1444_v38 = vpop.xlane.xlu1 %1443  ;;  %v1435_v62 = vpop.xlane.xlu2 %1434 }
 0x4d5   : > { %v1460_v39 = vsub.f32 %v1428_v3, %v1444_v38  ;;  %v1457_v0 = vsub.f32 %v3443_v58, %v1435_v62  ;;  %v2439_v38 = vld [vmem:[%s3226_s24] sm:$0xff] }
 0x4d7   : > { %v3458_v40 = vpop.eup %2657  ;;  %v1471_v47 = vmul.f32 1.442695, %v1460_v39  ;;  %v1465_v1 = vmul.f32 1.442695, %v1457_v0 }
 0x4d8   : > { %v2660_v41 = vpop.eup %2659  ;;  %v1499_v46 = vsel %vm1050_vm2, %v3458_v40, 0.0 }
 0x4d9   : > { %2661 = vpow2.f32 %v1471_v47  ;;  %1500 = vadd.xlane.f32.xlu2 %v1499_v46  ;;  %v1496_v49 = vsel %vm1050_vm2, %v2660_v41, 0.0 }
 0x4da   : > { %1497 = vadd.xlane.f32.xlu1 %v1496_v49 }
 0x4dc   : > { %v1456_v50 = vpop.xlane.xlu1 %1455 }
 0x4dd   : > { %v1464_v51 = vsub.f32 %v1432_v11, %v1456_v50 }
 0x4df   : > { %v2662_v53 = vpop.eup %2661  ;;  %v1479_v57 = vmul.f32 1.442695, %v1464_v51 }
 0x4e0   : > { %v1490_v59 = vsel %vm1050_vm2, %v2662_v53, 0.0 }
 0x4e1   : > { %2663 = vpow2.f32 %v1479_v57  ;;  %1491 = vadd.xlane.f32.xlu2 %v1490_v59 }
 0x4e2   : > { %2665 = vpow2.f32 %v1465_v1 }
 0x4e7   : > { %v2664_v60 = vpop.eup %2663 }
 0x4e8   : > { %v1502_v61 = vsel %vm1050_vm2, %v2664_v60, 0.0 }
 0x4e9   : > { %1503 = vadd.xlane.f32.xlu0 %v1502_v61 }
 0x4f3   : > { %1559 = vrot.lane.b32.xlu1 %v3357_v17, %s2991_s1 }
 0x4f9   : > { %1584 = vrot.lane.b32.xlu2 %v3353_v13, %s2991_s1  ;;  %v1438_v13 = vpop.xlane.xlu0 %1437 }
 0x4fa   : > { %v1458_v17 = vsub.f32 %v3448_v10, %v1438_v13 }
 0x4fd   : > { %1609 = vrot.lane.b32.xlu0 %v3361_v19, %s2991_s1  ;;  %v3483_v19 = vpop.eup %2665 }
 0x4fe   : > { %v1481_v29 = vsel %vm1050_vm2, %v3483_v19, 0.0 }
 0x501   : > { %1534 = vrot.lane.b32.xlu2 %v3388_v36, %s2991_s1  ;;  %v1467_v36 = vmul.f32 1.442695, %v1458_v17  ;;  %s831_s1 = scalar_lea.vmem %s3754_s0, %s2434_s5 }
 0x503   : > { %2667 = vpow2.f32 %v1467_v36 }
 0x505   : > { %v1489_v48 = vpop.xlane.xlu1 %1488 }
 0x509   : > { %2582 = vrot.lane.b32.xlu2 %v2581_v37, %s2992_s18  ;;  %v3491_v34 = vpop.eup %2667 }
 0x50a   : > { %v1484_v37 = vsel %vm1050_vm2, %v3491_v34, 0.0 }
 0x511   : > { %2587 = vrot.lane.b32.xlu2 %v2586_v18, %s2993_s4 }
 0x519   : > { %2592 = vrot.lane.b32.xlu2 %v2591_v32, %s2994_s29 }
 0x51d   : > { %1482 = vadd.xlane.f32.xlu1 %v1481_v29 }
 0x527   : > { %1485 = vadd.xlane.f32.xlu0 %v1484_v37 }
 0x544   : > { %v1495_v42 = vpop.xlane.xlu0 %1494 }
 0x545   : > { %2669 = vrcp.f32 %v1495_v42 }
 0x54b   : > { %v2670_v2 = vpop.eup %2669 }
 0x54c   : > { %v1501_v18 = vpop.xlane.xlu2 %1500  ;;  %v1517_v31 = vmul.f32 %v2670_v2, %v2656_v55 }
 0x54d   : > { %v1498_v54 = vpop.xlane.xlu1 %1497 }
 0x54e   : > { %2671 = vrcp.f32 %v1498_v54  ;;  %v1525_v3 = vpack.c.bf16 %v1517_v31, %v1517_v31 }
 0x54f   : > { %2673 = vrcp.f32 %v1489_v48 }
 0x550   : > { %v1581_v6 = vunpack.c.l.b16 %v1525_v3 }
 0x554   : > { %v2672_v26 = vpop.eup %2671  ;;  %v1492_v32 = vpop.xlane.xlu2 %1491 }
 0x555   : > { %v1518_v43 = vmul.f32 %v2672_v26, %v2660_v41  ;;  %2675 = vrcp.f32 %v1492_v32  ;;  %v2674_v58 = vpop.eup %2673 }
 0x556   : > { %v1515_v10 = vmul.f32 %v2674_v58, %v3453_v44 }
 0x557   : > { %v1526_v52 = vpack.c.bf16 %v1518_v43, %v1518_v43 }
 0x558   : > { %v1523_v14 = vpack.c.bf16 %v1515_v10, %v1515_v10 }
 0x559   : > { %v1582_v4 = vunpack.c.l.b16 %v1526_v52 }
 0x55a   : > { %v1556_v21 = vunpack.c.l.b16 %v1523_v14  ;;  %v2704_v14 = vld [vmem:[%s3255_s25 + $0x8] sm:$0xff] }
 0x55b   : > { %v2676_v5 = vpop.eup %2675  ;;  %v1583_v11 = vpack.c.b16 %v1582_v4, %v1581_v6 }
 0x55c   : > { %v1516_v7 = vmul.f32 %v2676_v5, %v2662_v53  ;;  %v1585_v8 = vpop.permute.xlu2 %1584  ;;  %v1504_v9 = vpop.xlane.xlu0 %1503  ;;  %v2614_v5 = vld [vmem:[%s820_s7] ss:$0 sm:$0xff] }
 0x55d   : > { %2677 = vrcp.f32 %v1504_v9  ;;  %1597 = vmatpush.bf16.msrb.mxu0 %v1585_v8  ;;  %v2703_v8 = vld [vmem:[%s3255_s25] sm:$0xff] }
 0x55e   : > { %2679 = vrcp.f32 %v1501_v18  ;;  %v1524_v12 = vpack.c.bf16 %v1516_v7, %v1516_v7 }
 0x560   : > { %2387 = vmatmul.msk.bf16.vlgmr.msrb.gmra.mxu0 %vm1050_vm2, %v1583_v11  ;;  %v1557_v16 = vunpack.c.l.b16 %v1524_v12 }
 0x562   : > { %v1558_v25 = vpack.c.b16 %v1557_v16, %v1556_v21 }
 0x563   : > { %v2678_v15 = vpop.eup %2677 }
 0x564   : > { %v2680_v35 = vpop.eup %2679  ;;  %v1535_v20 = vpop.permute.xlu2 %1534  ;;  %v1520_v22 = vmul.f32 %v2678_v15, %v2664_v60 }
 0x565   : > { %v1560_v23 = vpop.permute.xlu1 %1559  ;;  %1547 = vmatpush.bf16.msrb.mxu2 %v1535_v20  ;;  %v1519_v44 = vmul.f32 %v2680_v35, %v3458_v40 }
 0x566   : > { %1572 = vmatpush.bf16.msrb.mxu3 %v1560_v23  ;;  %v1528_v27 = vpack.c.bf16 %v1520_v22, %v1520_v22 }
 0x567   : > { %v1527_v28 = vpack.c.bf16 %v1519_v44, %v1519_v44 }
 0x568   : > { %v1607_v33 = vunpack.c.l.b16 %v1528_v27 }
 0x569   : > { %2386 = vmatmul.msk.bf16.vlgmr.msrb.gmra.mxu3 %vm1050_vm2, %v1558_v25  ;;  %v1606_v55 = vunpack.c.l.b16 %v1527_v28  ;;  %1693 = vmatpush.bf16.msra.mxu2 %v2440_v30 }
 0x56b   : > { %v1608_v63 = vpack.c.b16 %v1607_v33, %v1606_v55 }
 0x56c   : > { %v2583_v47 = vpop.permute.xlu2 %2582 }
 0x56d   : > { %1694 = vmatpush.bf16.msra.mxu2 %v2439_v38  ;;  %v2585_v0 = vunpack.i.h.bf16 %v2583_v47  ;;  %v2584_v1 = vunpack.i.l.bf16 %v2583_v47  ;;  %v2995_v47 = vmov 32.0  }
 0x56f   : > { %v1610_v24 = vpop.permute.xlu0 %1609 }
 0x570   : > { %1622 = vmatpush.bf16.msrb.mxu1 %v1610_v24 }
 0x573   : > { %2388 = vmatmul.msk.bf16.vlgmr.msrb.gmra.mxu1 %vm1050_vm2, %v1608_v63 }
 0x574   : > { %v2588_v53 = vpop.permute.xlu2 %2587 }
 0x575   : > { %v2590_v13 = vunpack.i.h.bf16 %v2588_v53  ;;  %v2589_v17 = vunpack.i.l.bf16 %v2588_v53 }
 0x57c   : > { %v2593_v62 = vpop.permute.xlu2 %2592 }
 0x57d   : > { %v2595_v36 = vunpack.i.h.bf16 %v2593_v62  ;;  %v2594_v29 = vunpack.i.l.bf16 %v2593_v62 }
 0x590   : > { %v1483_v39 = vpop.xlane.xlu1 %1482 }
 0x591   : > { %2681 = vrcp.f32 %v1483_v39 }
 0x597   : > { %v2682_v41 = vpop.eup %2681 }
 0x598   : > { %v1513_v46 = vmul.f32 %v2682_v41, %v3483_v19  ;;  %v1272_v19 = vsel %vm929_vm1, %v3438_v56, %v2585_v0 }
 0x599   : > { %v1274_v48 = vsel %vm1050_vm2, %v1272_v19, %v2590_v13 }
 0x59a   : > { %v1486_v40 = vpop.xlane.xlu0 %1485  ;;  %v1521_v50 = vpack.c.bf16 %v1513_v46, %v1513_v46  ;;  %v1277_v18 = vsel %vm1275_vm3, %v1274_v48, %v2595_v36 }
 0x59b   : > { %2683 = vrcp.f32 %v1486_v40 }
 0x59c   : > { %v1531_v59 = vunpack.c.l.b16 %v1521_v50  ;;  %2685 = vrcp.f32 %v2995_v47 }
 0x5a1   : > { %v2684_v49 = vpop.eup %2683 }
 0x5a2   : > { %v1514_v51 = vmul.f32 %v2684_v49, %v3491_v34  ;;  %v1271_v34 = vsel %vm929_vm1, %v3436_v45, %v2584_v1  ;;  %v2686_v40 = vpop.eup %2685  ;;  %v2705_v1 = vld [vmem:[%s3255_s25 + $0x10] sm:$0xff] }
 0x5a3   : > { %v1273_v37 = vsel %vm1050_vm2, %v1271_v34, %v2589_v17  ;;  %v1725_v41 = vmul.f32 32.0, %v2686_v40  ;;  %vm1729_vm4 = vweird.f32 %v2686_v40 }
 0x5a4   : > { %v1522_v57 = vpack.c.bf16 %v1514_v51, %v1514_v51  ;;  %v1276_v42 = vsel %vm1275_vm3, %v1273_v37, %v2594_v29  ;;  %v2706_v37 = vld [vmem:[%s3255_s25 + $0x18] sm:$0xff]  ;;  %s826_s25 = scalar_lea.vmem %s3753_s11, %s3243_s6 }
 0x5a5   : > { %v1659_v54 = vpack.c.bf16 %v1277_v18, %v1276_v42  ;;  %v1726_v46 = vsub.f32 1.0, %v1725_v41 }
 0x5a6   : > { %v1532_v60 = vunpack.c.l.b16 %v1522_v57 }
 0x5a7   : > { %v1727_v49 = vmul.f32 %v2686_v40, %v1726_v46 }
 0x5a8   : > { %v1533_v61 = vpack.c.b16 %v1532_v60, %v1531_v59 }
 0x5a9   : > { %v1728_v50 = vadd.f32 %v2686_v40, %v1727_v49 }
 0x5aa   : > { %2385 = vmatmul.msk.bf16.vlgmr.msrb.gmra.mxu2 %vm1050_vm2, %v1533_v61 }
 0x5ab   : > { %v3536_v51 = vsel %vm1729_vm4, %v2686_v40, %v1728_v50 }
 0x5ba   : > { %2397 = vmatmul.msk.bf16.vlgmr.msra.gmra.mxu2 %vm866_vm0, %v1659_v54 }
 0x5dd   : > { %v1599_v2 = vpop.f32.mrf.mxu0 }
 0x5e5   : > { %v1601_v56 = vpop.f32.mrf.mxu0 }
 0x5e6   : > { %v2596_v26 = vpack.i.bf16 %v1601_v56, %v1599_v2 }
 0x5e8   : > { %2597 = vrot.lane.b32.xlu1 %v2596_v26, %s2993_s4 }
 0x5ec   : > { %v1574_v45 = vpop.f32.mrf.mxu3 }
 0x5f0   : > { %v1624_v31 = vpop.f32.mrf.mxu1 }
 0x5f4   : > { %v1576_v32 = vpop.f32.mrf.mxu3 }
 0x5f5   : > { %v2601_v43 = vpack.i.bf16 %v1576_v32, %v1574_v45 }
 0x5f7   : > { %2602 = vrot.lane.b32.xlu2 %v2601_v43, %s2992_s18 }
 0x5f8   : > { %v1626_v52 = vpop.f32.mrf.mxu1 }
 0x5f9   : > { %v2606_v3 = vpack.i.bf16 %v1626_v52, %v1624_v31 }
 0x5ff   : > { %2607 = vrot.lane.b32.xlu2 %v2606_v3, %s2994_s29  ;;  %s3755_s29 = sld [smem:[#allocation35_spill]] }
 0x605   : > { %s834_s24 = scalar_lea.vmem %s3755_s29, %s3243_s6 }
 0x62d   : > { %v1549_v58 = vpop.f32.mrf.mxu2 }
 0x635   : > { %v1551_v4 = vpop.f32.mrf.mxu2 }
 0x63d   : > { %v1696_v6 = vpop.f32.mrf.mxu2 }
 0x63e   : > { %v1697_v7 = vadd.f32 %v2614_v5, %v1696_v6 }
 0x640   : > { %v1706_v9 = vadd.f32 %v2703_v8, %v1697_v7  ;;  %v2441_v8 = vld [vmem:[%s3233_s19] sm:$0xff] }
 0x642   : > { %v1712_v10 = vsel %vm866_vm0, %v1706_v9, 0.0 }
 0x643   : > { %1713 = vadd.xlane.f32.xlu0 %v1712_v10 }
 0x645   : > { %v1698_v11 = vpop.f32.mrf.mxu2 }
 0x646   : > { %v1699_v12 = vadd.f32 %v2614_v5, %v1698_v11 }
 0x648   : > { %v1707_v15 = vadd.f32 %v2704_v14, %v1699_v12 }
 0x64a   : > { %v1715_v16 = vsel %vm866_vm0, %v1707_v15, 0.0 }
 0x64b   : > { %1716 = vadd.xlane.f32.xlu2 %v1715_v16 }
 0x651   : > { %v2603_v35 = vpop.permute.xlu2 %2602 }
 0x652   : > { %v2605_v20 = vunpack.i.h.bf16 %v2603_v35  ;;  %v2604_v21 = vunpack.i.l.bf16 %v2603_v35 }
 0x654   : > { %v1653_v27 = vsel %vm929_vm1, %v1549_v58, %v2604_v21  ;;  %v1654_v28 = vsel %vm929_vm1, %v1551_v4, %v2605_v20  ;;  %v2442_v58 = vld [vmem:[%s3233_s19 + $0x8] sm:$0xff] }
 0x655   : > { %1855 = vmatpush.bf16.msra.mxu3 %v2442_v58 }
 0x659   : > { %v2608_v22 = vpop.permute.xlu2 %2607  ;;  %1856 = vmatpush.bf16.msra.mxu3 %v2441_v8 }
 0x65a   : > { %v2598_v23 = vpop.permute.xlu1 %2597  ;;  %v2610_v33 = vunpack.i.h.bf16 %v2608_v22  ;;  %v2609_v55 = vunpack.i.l.bf16 %v2608_v22 }
 0x65b   : > { %v2600_v44 = vunpack.i.h.bf16 %v2598_v23  ;;  %v2599_v25 = vunpack.i.l.bf16 %v2598_v23 }
 0x65d   : > { %v1655_v24 = vsel %vm1050_vm2, %v1653_v27, %v2599_v25  ;;  %v1656_v63 = vsel %vm1050_vm2, %v1654_v28, %v2600_v44  ;;  %vm1910_vm2 = vcmask 523264  }
 0x65e   : > { %v1657_v30 = vsel %vm1275_vm3, %v1655_v24, %v2609_v55  ;;  %v1658_v38 = vsel %vm1275_vm3, %v1656_v63, %v2610_v33  ;;  %v2615_v33 = vld [vmem:[%s823_s27] ss:$0 sm:$0xff]  ;;  %s837_s27 = scalar_lea.vmem %s3756_s26, %s3243_s6 }
 0x65f   : > { %v1660_v39 = vpack.c.bf16 %v1658_v38, %v1657_v30  ;;  %v2616_v30 = vld [vmem:[%s679_s28] ss:$0 sm:$0xff]  ;;  %s3757_s28 = sld [smem:[#allocation37_spill]] }
 0x661   : > { %2398 = vmatmul.msk.bf16.gmra.mxu2 %vm866_vm0, %v1660_v39 }
 0x665   : > { %s2907_s20 = scalar_lea.hbm %s3757_s28, 64 }
 0x6b6   : > { %v1714_v36 = vpop.xlane.xlu0 %1713 }
 0x6b7   : > { %v1731_v19 = vmul.f32 %v3536_v51, %v1714_v36 }
 0x6b9   : > { %v1735_v42 = vsub.f32 %v1706_v9, %v1731_v19 }
 0x6bb   : > { %v1739_v54 = vmul.f32 %v1735_v42, %v1735_v42 }
 0x6bd   : > { %v1743_v2 = vsel %vm866_vm0, %v1739_v54, 0.0 }
 0x6be   : > { %v1717_v53 = vpop.xlane.xlu2 %1716 }
 0x6bf   : > { %v1732_v57 = vmul.f32 %v3536_v51, %v1717_v53 }
 0x6c1   : > { %v3539_v59 = vsub.f32 %v1707_v15, %v1732_v57 }
 0x6c3   : > { %v1740_v60 = vmul.f32 %v3539_v59, %v3539_v59 }
 0x6c5   : > { %v1746_v61 = vsel %vm866_vm0, %v1740_v60, 0.0 }
 0x6c6   : > { %1747 = vadd.xlane.f32.xlu1 %v1746_v61 }
 0x6e4   : > { %v1701_v62 = vpop.f32.mrf.mxu2 }
 0x6e5   : > { %v1702_v0 = vadd.f32 %v2614_v5, %v1701_v62 }
 0x6e7   : > { %v1708_v13 = vadd.f32 %v2705_v1, %v1702_v0 }
 0x6e9   : > { %v1718_v17 = vsel %vm866_vm0, %v1708_v13, 0.0 }
 0x6ea   : > { %1719 = vadd.xlane.f32.xlu0 %v1718_v17 }
 0x6ec   : > { %v1703_v29 = vpop.f32.mrf.mxu2 }
 0x6ed   : > { %v1704_v34 = vadd.f32 %v2614_v5, %v1703_v29 }
 0x6ef   : > { %v1709_v48 = vadd.f32 %v2706_v37, %v1704_v34  ;;  %v2446_v34 = vld [vmem:[%s831_s1 + $0x18] sm:$0xff] }
 0x6f0   : > { %1921 = vmatpush.bf16.msra.mxu0 %v2446_v34 }
 0x6f1   : > { %v1721_v18 = vsel %vm866_vm0, %v1709_v48, 0.0 }
 0x6f2   : > { %1722 = vadd.xlane.f32.xlu0 %v1721_v18  ;;  %v2445_v18 = vld [vmem:[%s831_s1 + $0x10] sm:$0xff] }
 0x6f4   : > { %1922 = vmatpush.bf16.msra.mxu0 %v2445_v18 }
 0x6fa   : > { %1744 = vadd.xlane.f32.xlu0 %v1743_v2 }
 0x739   : > { %v1748_v56 = vpop.xlane.xlu1 %1747 }
 0x73a   : > { %v1756_v26 = vmul.f32 %v1748_v56, %v3536_v51 }
 0x73c   : > { %v1760_v45 = vadd.f32 1e-05, %v1756_v26  ;;  %v2444_v26 = vld [vmem:[%s831_s1 + $0x8] sm:$0xff] }
 0x73d   : > { %1923 = vmatpush.bf16.msra.mxu0 %v2444_v26 }
 0x73e   : > { %2687 = vrsqrt.f32 %v1760_v45  ;;  %vm1779_vm6 = vweird.f32 %v1760_v45 }
 0x744   : > { %v2688_v5 = vpop.eup %2687 }
 0x745   : > { %v1774_v9 = vmul.f32 %v2688_v5, %v1760_v45  ;;  %vm1780_vm5 = vweird.f32 %v2688_v5 }
 0x746   : > { %vm1781_vm7 = vmor %vm1779_vm6, %vm1780_vm5 }
 0x747   : > { %v1775_v12 = vmul.f32 %v2688_v5, %v1774_v9 }
 0x749   : > { %v1776_v35 = vmul.f32 0.5, %v1775_v12 }
 0x74b   : > { %v1777_v20 = vsub.f32 1.5, %v1776_v35 }
 0x74d   : > { %v1778_v22 = vmul.f32 %v2688_v5, %v1777_v20 }
 0x74f   : > { %v1782_v25 = vsel %vm1781_vm7, %v2688_v5, %v1778_v22  ;;  %v2617_v5 = vld [vmem:[%s826_s25] ss:$0 sm:$0xff]  ;;  %s2356_s25 = sshll.u32 %s3209_s3, 5 }
 0x750   : > { %v1804_v55 = vmul.f32 %v1782_v25, %v3539_v59  ;;  %v2618_v22 = vld [vmem:[%s834_s24] ss:$0 sm:$0xff]  ;;  %s3640_s15 = scalar_lea.vmem [#allocation13], %s2356_s25 }
 0x752   : > { %v1811_v38 = vmul.f32 %v2615_v33, %v1804_v55 }
 0x754   : > { %v3578_v40 = vadd.f32 %v2616_v30, %v1811_v38 }
 0x75d   : > { %v1720_v31 = vpop.xlane.xlu0 %1719 }
 0x75e   : > { %v1733_v32 = vmul.f32 %v3536_v51, %v1720_v31 }
 0x760   : > { %v3552_v43 = vsub.f32 %v1708_v13, %v1733_v32 }
 0x762   : > { %v1741_v52 = vmul.f32 %v3552_v43, %v3552_v43 }
 0x764   : > { %v1749_v3 = vsel %vm866_vm0, %v1741_v52, 0.0  ;;  %v2443_v52 = vld [vmem:[%s831_s1] sm:$0xff]  ;;  %s2064_s1 = sshll.u32 %s3640_s15, 4  ;;  %s2065_s1 = int_to_ptr.vmem [resolvable:$true] %s2064_s1 }
 0x765   : > { %1750 = vadd.xlane.f32.xlu0 %v1749_v3  ;;  %v1723_v4 = vpop.xlane.xlu0 %1722  ;;  %1924 = vmatpush.bf16.msra.mxu0 %v2443_v52 }
 0x766   : > { %v1734_v6 = vmul.f32 %v3536_v51, %v1723_v4 }
 0x768   : > { %v3559_v7 = vsub.f32 %v1709_v48, %v1734_v6 }
 0x76a   : > { %v1742_v10 = vmul.f32 %v3559_v7, %v3559_v7 }
 0x76c   : > { %v1752_v11 = vsel %vm866_vm0, %v1742_v10, 0.0 }
 0x76d   : > { %1753 = vadd.xlane.f32.xlu0 %v1752_v11  ;;  %v1745_v14 = vpop.xlane.xlu0 %1744 }
 0x76e   : > { %v1755_v15 = vmul.f32 %v1745_v14, %v3536_v51 }
 0x770   : > { %v1759_v16 = vadd.f32 1e-05, %v1755_v15 }
 0x772   : > { %2689 = vrsqrt.f32 %v1759_v16  ;;  %vm1769_vm9 = vweird.f32 %v1759_v16 }
 0x778   : > { %v2690_v21 = vpop.eup %2689 }
 0x779   : > { %v1764_v23 = vmul.f32 %v2690_v21, %v1759_v16  ;;  %vm1770_vm8 = vweird.f32 %v2690_v21 }
 0x77a   : > { %vm1771_vm10 = vmor %vm1769_vm9, %vm1770_vm8 }
 0x77b   : > { %v1765_v44 = vmul.f32 %v2690_v21, %v1764_v23 }
 0x77d   : > { %v1766_v27 = vmul.f32 0.5, %v1765_v44 }
 0x77f   : > { %v1767_v28 = vsub.f32 1.5, %v1766_v27 }
 0x781   : > { %v1768_v24 = vmul.f32 %v2690_v21, %v1767_v28 }
 0x783   : > { %v1772_v63 = vsel %vm1771_vm10, %v2690_v21, %v1768_v24 }
 0x784   : > { %v1803_v39 = vmul.f32 %v1772_v63, %v1735_v42 }
 0x786   : > { %v1810_v47 = vmul.f32 %v2615_v33, %v1803_v39 }
 0x788   : > { %v3580_v41 = vadd.f32 %v2616_v30, %v1810_v47 }
 0x78a   : > { %v1821_v46 = vpack.c.bf16 %v3578_v40, %v3580_v41 }
 0x78c   : > { %2407 = vmatmul.msk.bf16.vlgmr.msra.gmra.mxu3 %vm866_vm0, %v1821_v46 }
 0x7d8   : > { %v1751_v49 = vpop.xlane.xlu0 %1750 }
 0x7d9   : > { %v1757_v50 = vmul.f32 %v1751_v49, %v3536_v51 }
 0x7db   : > { %v1761_v53 = vadd.f32 1e-05, %v1757_v50 }
 0x7dd   : > { %2691 = vrsqrt.f32 %v1761_v53  ;;  %vm1789_vm12 = vweird.f32 %v1761_v53 }
 0x7e0   : > { %v1754_v57 = vpop.xlane.xlu0 %1753 }
 0x7e1   : > { %v1758_v59 = vmul.f32 %v1754_v57, %v3536_v51 }
 0x7e3   : > { %v2692_v60 = vpop.eup %2691  ;;  %v1762_v61 = vadd.f32 1e-05, %v1758_v59 }
 0x7e4   : > { %v1784_v62 = vmul.f32 %v2692_v60, %v1761_v53  ;;  %vm1790_vm11 = vweird.f32 %v2692_v60 }
 0x7e5   : > { %2693 = vrsqrt.f32 %v1762_v61  ;;  %vm1791_vm13 = vmor %vm1789_vm12, %vm1790_vm11  ;;  %vm1799_vm15 = vweird.f32 %v1762_v61 }
 0x7e6   : > { %v1785_v0 = vmul.f32 %v2692_v60, %v1784_v62 }
 0x7e8   : > { %v1786_v1 = vmul.f32 0.5, %v1785_v0 }
 0x7ea   : > { %v1787_v13 = vsub.f32 1.5, %v1786_v1 }
 0x7eb   : > { %v2694_v17 = vpop.eup %2693 }
 0x7ec   : > { %v1788_v36 = vmul.f32 %v2692_v60, %v1787_v13  ;;  %v1794_v29 = vmul.f32 %v2694_v17, %v1762_v61  ;;  %vm1800_vm14 = vweird.f32 %v2694_v17 }
 0x7ed   : > { %vm1801_vm1 = vmor %vm1799_vm15, %vm1800_vm14 }
 0x7ee   : > { %v1795_v19 = vmul.f32 %v2694_v17, %v1794_v29  ;;  %v1792_v37 = vsel %vm1791_vm13, %v2692_v60, %v1788_v36 }
 0x7ef   : > { %v1805_v54 = vmul.f32 %v1792_v37, %v3552_v43 }
 0x7f0   : > { %v1796_v48 = vmul.f32 0.5, %v1795_v19 }
 0x7f1   : > { %v1812_v31 = vmul.f32 %v2615_v33, %v1805_v54 }
 0x7f2   : > { %v1797_v42 = vsub.f32 1.5, %v1796_v48 }
 0x7f3   : > { %v1819_v3 = vadd.f32 %v2616_v30, %v1812_v31 }
 0x7f4   : > { %v1798_v2 = vmul.f32 %v2694_v17, %v1797_v42 }
 0x7f6   : > { %v1802_v56 = vsel %vm1801_vm1, %v2694_v17, %v1798_v2 }
 0x7f7   : > { %v1806_v45 = vmul.f32 %v1802_v56, %v3559_v7 }
 0x7f9   : > { %v1813_v32 = vmul.f32 %v2615_v33, %v1806_v45 }
 0x7fb   : > { %v1820_v58 = vadd.f32 %v2616_v30, %v1813_v32 }
 0x7fd   : > { %v1822_v4 = vpack.c.bf16 %v1820_v58, %v1819_v3 }
 0x7ff   : > { %2408 = vmatmul.msk.bf16.gmra.mxu3 %vm866_vm0, %v1822_v4 }
 0x80f   : > { %v1858_v43 = vpop.f32.mrf.mxu3 }
 0x810   : > { %v1859_v6 = vadd.f32 %v2617_v5, %v1858_v43 }
 0x812   : > { %v1868_v9 = vmax.f32 %v1859_v6, 0.0 }
 0x817   : > { %v1860_v7 = vpop.f32.mrf.mxu3 }
 0x818   : > { %v1861_v8 = vadd.f32 %v2617_v5, %v1860_v7  ;;  %v2619_v7 = vld [vmem:[%s837_s27] ss:$0 sm:$0xff] }
 0x81a   : > { %v1869_v10 = vmax.f32 %v1861_v8, 0.0 }
 0x81c   : > { %v1872_v11 = vpack.c.bf16 %v1869_v10, %v1868_v9  ;;  %v2620_v10 = vld [vmem:[%s698_s22] ss:$0 sm:$0xff]  ;;  %s2447_s22 = sshll.u32 %s2973_s16, 5  ;;  %s2049_s16 = scalar_lea.sflag [#allocation4], %s3209_s3 }
 0x81d   : > { %s2063_s0 = scalar_lea.hbm %s3757_s28, %s2447_s22 }
 0x81e   : > { %2425 = vmatmul.msk.bf16.vlgmr.msra.gmra.mxu0 %vm1910_vm2, %v1872_v11  ;;  %s2066_s5 = sshll.u32 %s2063_s0, 4  ;;  %s2067_s5 = int_to_ptr.hbm [resolvable:$true] %s2066_s5 }
 0x81f   : > { %s2901_s4 = sshra.s32 %s2067_s5, 4  ;;  %s2902_s4 = int_to_ptr.hbm [resolvable:$true] %s2901_s4 }
 0x820   : > { %s2903_s29 = scalar_lea.hbm %s2902_s4, 32  ;;  %p2908_p8 = scmp.lt.s32.totalorder %s2902_s4, %s3757_s28 }
 0x821   : > { %p2904_p5 = scmp.ne.s32.totalorder %s2902_s4, %s2903_s29  ;;  %p2909_p10 = scmp.lt.s32.totalorder %s2907_s20, %s2903_s29 }
 0x823   : > { %p2905_p6 = pnand %p2904_p5, %p3127_p9  ;;  %p2910_p13 = por %p2909_p10, %p2908_p8 }
 0x825   : > { %p2906_p7 = pneg %p2905_p6 }
 0x827   : > { %p2911_p0 = pnand %p2910_p13, %p2906_p7 }
 0x882   : > { %v1863_v12 = vpop.f32.mrf.mxu3 }
 0x883   : > { %v1864_v14 = vadd.f32 %v2617_v5, %v1863_v12 }
 0x885   : > { %v1870_v35 = vmax.f32 %v1864_v14, 0.0 }
 0x88a   : > { %v1865_v15 = vpop.f32.mrf.mxu3 }
 0x88b   : > { %v1866_v16 = vadd.f32 %v2617_v5, %v1865_v15 }
 0x88d   : > { %v1871_v20 = vmax.f32 %v1866_v16, 0.0 }
 0x88f   : > { %v1873_v21 = vpack.c.bf16 %v1871_v20, %v1870_v35 }
 0x891   : > { %2426 = vmatmul.msk.bf16.gmra.mxu0 %vm1910_vm2, %v1873_v21 }
 0x89b   : > { %v1926_v23 = vpop.f32.mrf.mxu0 }
 0x89c   : > { %v1927_v44 = vadd.f32 %v2618_v22, %v1926_v23 }
 0x89e   : > { %v1936_v25 = vadd.f32 %v1927_v44, %v3580_v41 }
 0x8a0   : > { %v1942_v27 = vsel %vm866_vm0, %v1936_v25, 0.0 }
 0x8a1   : > { %1943 = vadd.xlane.f32.xlu0 %v1942_v27 }
 0x8a3   : > { %v1928_v28 = vpop.f32.mrf.mxu0 }
 0x8a4   : > { %v1929_v33 = vadd.f32 %v2618_v22, %v1928_v28 }
 0x8a6   : > { %v1937_v55 = vadd.f32 %v1929_v33, %v3578_v40 }
 0x8a8   : > { %v1945_v24 = vsel %vm866_vm0, %v1937_v55, 0.0 }
 0x8a9   : > { %1946 = vadd.xlane.f32.xlu2 %v1945_v24 }
 0x90e   : > { %v1931_v63 = vpop.f32.mrf.mxu0 }
 0x90f   : > { %v1932_v30 = vadd.f32 %v2618_v22, %v1931_v63 }
 0x911   : > { %v1938_v38 = vadd.f32 %v1932_v30, %v1819_v3 }
 0x913   : > { %v1948_v39 = vsel %vm866_vm0, %v1938_v38, 0.0 }
 0x914   : > { %1949 = vadd.xlane.f32.xlu0 %v1948_v39  ;;  %v1944_v47 = vpop.xlane.xlu0 %1943 }
 0x915   : > { %v1954_v41 = vmul.f32 %v1944_v47, %v3536_v51 }
 0x916   : > { %v1933_v46 = vpop.f32.mrf.mxu0 }
 0x917   : > { %v1958_v49 = vsub.f32 %v1936_v25, %v1954_v41  ;;  %v1934_v50 = vadd.f32 %v2618_v22, %v1933_v46 }
 0x919   : > { %v1939_v40 = vadd.f32 %v1934_v50, %v1820_v58  ;;  %v1962_v53 = vmul.f32 %v1958_v49, %v1958_v49 }
 0x91b   : > { %v1951_v57 = vsel %vm866_vm0, %v1939_v40, 0.0  ;;  %v1966_v59 = vsel %vm866_vm0, %v1962_v53, 0.0 }
 0x91c   : > { %v1947_v60 = vpop.xlane.xlu2 %1946  ;;  %1952 = vadd.xlane.f32.xlu2 %v1951_v57  ;;  %1967 = vadd.xlane.f32.xlu0 %v1966_v59 }
 0x91d   : > { %v1955_v61 = vmul.f32 %v1947_v60, %v3536_v51 }
 0x91f   : > { %v1959_v62 = vsub.f32 %v1937_v55, %v1955_v61 }
 0x921   : > { %v1963_v0 = vmul.f32 %v1959_v62, %v1959_v62 }
 0x923   : > { %v1969_v1 = vsel %vm866_vm0, %v1963_v0, 0.0 }
 0x924   : > { %1970 = vadd.xlane.f32.xlu2 %v1969_v1 }
 0x987   : > { %v1950_v13 = vpop.xlane.xlu0 %1949 }
 0x988   : > { %v1956_v17 = vmul.f32 %v1950_v13, %v3536_v51 }
 0x98a   : > { %v3619_v36 = vsub.f32 %v1938_v38, %v1956_v17 }
 0x98c   : > { %v1964_v29 = vmul.f32 %v3619_v36, %v3619_v36 }
 0x98e   : > { %v1972_v19 = vsel %vm866_vm0, %v1964_v29, 0.0 }
 0x98f   : > { %v1953_v34 = vpop.xlane.xlu2 %1952  ;;  %1973 = vadd.xlane.f32.xlu1 %v1972_v19  ;;  %v1968_v37 = vpop.xlane.xlu0 %1967 }
 0x990   : > { %v1957_v48 = vmul.f32 %v1953_v34, %v3536_v51  ;;  %v1978_v42 = vmul.f32 %v1968_v37, %v3536_v51 }
 0x992   : > { %v3626_v18 = vsub.f32 %v1939_v40, %v1957_v48  ;;  %v1982_v54 = vadd.f32 1e-05, %v1978_v42 }
 0x994   : > { %2695 = vrsqrt.f32 %v1982_v54  ;;  %v1965_v2 = vmul.f32 %v3626_v18, %v3626_v18  ;;  %vm1992_vm4 = vweird.f32 %v1982_v54 }
 0x996   : > { %v1975_v56 = vsel %vm866_vm0, %v1965_v2, 0.0 }
 0x997   : > { %v1971_v26 = vpop.xlane.xlu2 %1970  ;;  %1976 = vadd.xlane.f32.xlu0 %v1975_v56 }
 0x998   : > { %v1979_v45 = vmul.f32 %v1971_v26, %v3536_v51 }
 0x99a   : > { %v2696_v31 = vpop.eup %2695  ;;  %v1983_v32 = vadd.f32 1e-05, %v1979_v45 }
 0x99b   : > { %v1987_v52 = vmul.f32 %v2696_v31, %v1982_v54  ;;  %vm1993_vm3 = vweird.f32 %v2696_v31 }
 0x99c   : > { %2697 = vrsqrt.f32 %v1983_v32  ;;  %vm1994_vm5 = vmor %vm1992_vm4, %vm1993_vm3  ;;  %vm2002_vm7 = vweird.f32 %v1983_v32 }
 0x99d   : > { %v1988_v3 = vmul.f32 %v2696_v31, %v1987_v52 }
 0x99f   : > { %v1989_v58 = vmul.f32 0.5, %v1988_v3 }
 0x9a1   : > { %v1990_v4 = vsub.f32 1.5, %v1989_v58 }
 0x9a2   : > { %v2698_v43 = vpop.eup %2697 }
 0x9a3   : > { %v1991_v5 = vmul.f32 %v2696_v31, %v1990_v4  ;;  %v1997_v6 = vmul.f32 %v2698_v43, %v1983_v32  ;;  %vm2003_vm6 = vweird.f32 %v2698_v43 }
 0x9a4   : > { %vm2004_vm8 = vmor %vm2002_vm7, %vm2003_vm6 }
 0x9a5   : > { %v1995_v8 = vsel %vm1994_vm5, %v2696_v31, %v1991_v5  ;;  %v1998_v9 = vmul.f32 %v2698_v43, %v1997_v6 }
 0x9a6   : > { %v2026_v11 = vmul.f32 %v1995_v8, %v1958_v49 }
 0x9a7   : > { %v1999_v12 = vmul.f32 0.5, %v1998_v9 }
 0x9a8   : > { %v2033_v14 = vmul.f32 %v2619_v7, %v2026_v11 }
 0x9a9   : > { %v2000_v15 = vsub.f32 1.5, %v1999_v12 }
 0x9aa   : > { %v2040_v16 = vadd.f32 %v2620_v10, %v2033_v14 }
 0x9ab   : > { %v2001_v35 = vmul.f32 %v2698_v43, %v2000_v15 }
 0x9ac   : > { %2044 = vst.msk [vmem:[%s3640_s15] sm:$0xff] %vm866_vm0, %v2040_v16 }
 0x9ad   : > { %v2005_v20 = vsel %vm2004_vm8, %v2698_v43, %v2001_v35 }
 0x9ae   : > { %v2027_v21 = vmul.f32 %v2005_v20, %v1959_v62 }
 0x9b0   : > { %v2034_v22 = vmul.f32 %v2619_v7, %v2027_v21 }
 0x9b2   : > { %v2041_v23 = vadd.f32 %v2620_v10, %v2034_v22 }
 0x9b4   : > { %2045 = vst.msk [vmem:[%s3640_s15 + $0x8] sm:$0xff] %vm866_vm0, %v2041_v23 }
 0xa02   : > { %v1974_v44 = vpop.xlane.xlu1 %1973 }
 0xa03   : > { %v1980_v25 = vmul.f32 %v1974_v44, %v3536_v51 }
 0xa05   : > { %v1984_v27 = vadd.f32 1e-05, %v1980_v25 }
 0xa07   : > { %2699 = vrsqrt.f32 %v1984_v27  ;;  %vm2012_vm10 = vweird.f32 %v1984_v27 }
 0xa0a   : > { %v1977_v28 = vpop.xlane.xlu0 %1976 }
 0xa0b   : > { %v1981_v33 = vmul.f32 %v1977_v28, %v3536_v51 }
 0xa0d   : > { %v2700_v55 = vpop.eup %2699  ;;  %v1985_v24 = vadd.f32 1e-05, %v1981_v33 }
 0xa0e   : > { %v2007_v63 = vmul.f32 %v2700_v55, %v1984_v27  ;;  %vm2013_vm9 = vweird.f32 %v2700_v55 }
 0xa0f   : > { %2701 = vrsqrt.f32 %v1985_v24  ;;  %vm2014_vm11 = vmor %vm2012_vm10, %vm2013_vm9  ;;  %vm2022_vm13 = vweird.f32 %v1985_v24 }
 0xa10   : > { %v2008_v30 = vmul.f32 %v2700_v55, %v2007_v63 }
 0xa12   : > { %v2009_v38 = vmul.f32 0.5, %v2008_v30 }
 0xa14   : > { %v2010_v39 = vsub.f32 1.5, %v2009_v38 }
 0xa15   : > { %v2702_v47 = vpop.eup %2701 }
 0xa16   : > { %v2011_v41 = vmul.f32 %v2700_v55, %v2010_v39  ;;  %v2017_v46 = vmul.f32 %v2702_v47, %v1985_v24  ;;  %vm2023_vm12 = vweird.f32 %v2702_v47 }
 0xa17   : > { %vm2024_vm14 = vmor %vm2022_vm13, %vm2023_vm12 }
 0xa18   : > { %v2015_v49 = vsel %vm2014_vm11, %v2700_v55, %v2011_v41  ;;  %v2018_v50 = vmul.f32 %v2702_v47, %v2017_v46 }
 0xa19   : > { %v2028_v51 = vmul.f32 %v2015_v49, %v3619_v36 }
 0xa1a   : > { %v2019_v40 = vmul.f32 0.5, %v2018_v50 }
 0xa1b   : > { %v2035_v53 = vmul.f32 %v2619_v7, %v2028_v51 }
 0xa1c   : > { %v2020_v57 = vsub.f32 1.5, %v2019_v40 }
 0xa1d   : > { %v2042_v59 = vadd.f32 %v2620_v10, %v2035_v53 }
 0xa1e   : > { %v2021_v60 = vmul.f32 %v2702_v47, %v2020_v57 }
 0xa1f   : > { %2046 = vst.msk [vmem:[%s3640_s15 + $0x10] sm:$0xff] %vm866_vm0, %v2042_v59 }
 0xa20   : > { %v2025_v61 = vsel %vm2024_vm14, %v2702_v47, %v2021_v60 }
 0xa21   : > { %v2029_v62 = vmul.f32 %v2025_v61, %v3626_v18 }
 0xa23   : > { %v2036_v0 = vmul.f32 %v2619_v7, %v2029_v62 }
 0xa25   : > { %v2043_v1 = vadd.f32 %v2620_v10, %v2036_v0 }
 0xa27   : > { %2047 = vst.msk [vmem:[%s3640_s15 + $0x18] sm:$0xff] %vm866_vm0, %v2043_v1 }
 0xa28   : > { %2914 = shalt.err (!%p2911_p0)
}
 0xa29   : > { %s2996_s3 = smov 128  }
 0xa2a   : > { %2462 = dma.vmem_to_hbm [thread:$0]  (%p3127_p9), %s2065_s1, 512, %s2067_s5, %s2049_s16, %s2996_s3, %s2996_s3, %s2992_s18  }
 0xa2b PF: > { %s3759_s27 = sld [smem:[#allocation19_spill]]  ;;  %p2484_p1 = pnand %p2343_p12, %p3134_p11 }
 0xa2c   : > { %s3761_s10 = sld [smem:[#allocation21_spill]] }
 0xa2d   : > { %p2485_p2 = pneg %p2484_p1 }
 0xa31   : > { %s2081_s25 = sand.u32 1, %s3759_s27  }
 0xa32   : > { %s2082_s15 = scalar_lea.sflag [#allocation4], %s2081_s25 }
 0xa33   : > { %2956 = dma.done.wait (%p2485_p2), %s2082_s15, 512  }
 0xa34   : > { %2958 = vsyncadd (%p2485_p2), %s2082_s15, 4294966784  ;;  %s39_s18 = sadd.s32 1, %s3761_s10   ;;  %s3762_s22 = sld [smem:[#allocation20_spill]] }
 0xa35   : > { %p36_p3 = scmp.ge.s32.totalorder %s39_s18, 4   ;;  %s3763_s15 = sld [smem:[#allocation24_spill]] }
 0xa36   : > { %s3764_s6 = sld [smem:[#allocation22_spill]]  ;;  %s3765_s29 = smov %s2965_s30 }
 0xa37   : > { %s3767_s16 = smov %s2977_s17 }
 0xa38   :  { %38 = sbr.rel (!%p36_p3) target bundleno = 25 (0x19), region = 206 }
 0xa3a   : > { %s3766_s30 = smov %s3762_s22 }
 0xa3c   : > { %s3768_s17 = smov %s3764_s6 }
 0xa3d   :  { %2088 = vsyncpa [#allocation3], 1 }
 0xa3e   :  { %2090 = vsyncpa [#allocation3 + $0x1], 1 }
 0xa3f   :  { %2091 = vsyncpa [#allocation6], 1 }
 0xa40   :  { %2093 = vsyncpa [#allocation6 + $0x1], 1 }
 0xa41   :  { %2094 = vsyncpa [#allocation9], 1 }
 0xa42   :  { %2096 = vsyncpa [#allocation9 + $0x1], 1 }
 0xa43   :  { %2097 = vsyncpa [#allocation12], 1 }
 0xa44   :  { %2099 = vsyncpa [#allocation12 + $0x1], 1 }
 0xa45   :  { %2100 = vsyncpa [#allocation4], 1 }
 0xa46   :  { %2102 = vsyncpa [#allocation4 + $0x1], 1 }

</bundles_post_ra>
